<compile_context>
chip_gen: v6e
topology: v6e:2x2x1
jax: 0.10.0
libtpu: 0.0.40
codegen_flags: <defaults>
</compile_context>

<pallas_src>
from functools import partial

import jax
import jax.numpy as jnp
from jax.experimental import pallas as pl
from jax.experimental.pallas import tpu as pltpu


def _round_up(x, m):
    return ((x + m - 1) // m) * m


# ----------------------------------------------------------------------------
# Fused kernel: conv stack -> flatten bridge -> FC stack -> latent -> gumbel softmax
# ----------------------------------------------------------------------------
def _cat_vae_kernel(*refs, cfg):
    B = cfg["B"]
    b_pad = cfg["b_pad"]
    hw = cfg["hw"]
    conv_meta = cfg["conv_meta"]          # per conv layer: (tap_shifts, out_cols)
    n_extra_fc = cfg["n_extra_fc"]

    it = iter(refs)
    inv_t_ref = next(it)                                   # SMEM (1,)  = 1/temperature
    x_ref = next(it)                                       # (C0, V0)  flat batch-in-lanes
    conv_refs = [(next(it), next(it)) for _ in conv_meta]  # (taps (c_out,K), bias (c_out,1))
    w1_ref, b1_ref = next(it), next(it)                    # (c_out*HW, fc1), (1, fc1)
    fc_refs = [(next(it), next(it)) for _ in range(n_extra_fc)]
    wlat_ref, blat_ref = next(it), next(it)                # (fc_last, LATP), (1, LATP)
    gum_ref = next(it)                                     # (b_pad, LATP), pad lanes = -1e30
    reparam_ref, latent_ref = next(it), next(it)           # outputs (b_pad, LATP)

    # ---- conv stack: one matmul per layer (taps fused, batch folded into N) ----
    # Activation layout: (channels, B*HW + tail).  Column q = b*HW + j holds batch b's
    # value at spatial flat index j (original W stride).  Invalid spatial positions
    # carry finite garbage that is killed by zero rows in the permuted FC1 weights.
    h = x_ref[...]
    for (taps_ref, cbias_ref), (shifts, v_out) in zip(conv_refs, conv_meta):
        win = jnp.concatenate([h[:, s:s + v_out] for s in shifts], axis=0)  # (K, v_out)
        h = jnp.maximum(
            jnp.dot(taps_ref[...], win, preferred_element_type=jnp.float32)
            + cbias_ref[...],
            0.0)                                                            # (c_out, v_out)

    # ---- flatten bridge: assemble (b_pad, c_out*HW) LHS, single K=c_out*HW matmul ----
    c_last = h.shape[0]
    rows = [
        jnp.concatenate([h[c:c + 1, b * hw:(b + 1) * hw] for c in range(c_last)], axis=1)
        for b in range(B)
    ]                                                       # B rows of (1, c_out*HW)
    if b_pad > B:
        rows.append(jnp.zeros((b_pad - B, c_last * hw), jnp.float32))
    lhs = jnp.concatenate(rows, axis=0)                     # (b_pad, c_out*HW)

    hfc = jnp.maximum(
        jnp.dot(lhs, w1_ref[...], preferred_element_type=jnp.float32) + b1_ref[...],
        0.0)                                                # (b_pad, fc1)  Linear + ReLU

    # ---- remaining FC stack + latent layer ----
    for w_ref, b_ref in fc_refs:
        hfc = jnp.maximum(
            jnp.dot(hfc, w_ref[...], preferred_element_type=jnp.float32) + b_ref[...],
            0.0)
    latent = jnp.dot(hfc, wlat_ref[...],
                     preferred_element_type=jnp.float32) + blat_ref[...]   # (b_pad, LATP)
    latent_ref[...] = latent

    # ---- gumbel-softmax epilogue (pad-lane mask pre-baked into gum_ref) ----
    y = (latent + gum_ref[...]) * inv_t_ref[0]
    y = y - jnp.max(y, axis=-1, keepdims=True)
    e = jnp.exp(y)
    reparam_ref[...] = e / jnp.sum(e, axis=-1, keepdims=True)


# ----------------------------------------------------------------------------
# Parameter construction (PyTorch layout) and one-time kernel-layout preparation
# ----------------------------------------------------------------------------
def init_params(key, num_channels, conv_layers, conv_kernel_sizes, fc_layers,
                latent_dim, h, w):
    params = {"conv": [], "fc": []}
    in_ch = num_channels
    oh, ow = h, w
    for out_ch, k in zip(conv_layers, conv_kernel_sizes):
        key, kw_, kb_ = jax.random.split(key, 3)
        params["conv"].append(
            (jax.random.normal(kw_, (out_ch, in_ch, k, k), jnp.float32) * 0.1,
             jax.random.normal(kb_, (out_ch,), jnp.float32) * 0.01))
        in_ch = out_ch
        oh, ow = oh - k + 1, ow - k + 1
    in_feat = in_ch * oh * ow
    for f in fc_layers:
        key, kw_, kb_ = jax.random.split(key, 3)
        params["fc"].append(
            (jax.random.normal(kw_, (in_feat, f), jnp.float32) * 0.1,
             jax.random.normal(kb_, (f,), jnp.float32) * 0.01))
        in_feat = f
    key, kw_, kb_ = jax.random.split(key, 3)
    params["latent"] = (
        jax.random.normal(kw_, (in_feat, latent_dim), jnp.float32) * 0.1,
        jax.random.normal(kb_, (latent_dim,), jnp.float32) * 0.01)
    return params


def prepare_params(params, *, H, W, latent_dim):
    """One-time re-layout of PyTorch-style weights for the fused kernel."""
    kparams = {"conv": []}
    conv_ksizes = []
    oh, ow = H, W
    c_out_last = None
    for w_conv, b_conv in params["conv"]:
        c_out, c_in, kh, kw = w_conv.shape
        # Fused tap matrix (c_out, kh*kw*c_in); column index = (dy*kw+dx)*c_in + c,
        # matching the in-kernel window concat order.
        taps = jnp.transpose(w_conv, (0, 2, 3, 1)).reshape(c_out, kh * kw * c_in)
        kparams["conv"].append((taps, b_conv.reshape(c_out, 1)))
        conv_ksizes.append((kh, kw))
        oh, ow = oh - kh + 1, ow - kw + 1
        c_out_last = c_out

    # First FC layer: rows re-ordered to channel-major H*W grid positions; rows for
    # invalid (out-of-valid-conv-output) positions are zero.  Lane dim left UNPADDED
    # (cuts weight DMA ~4x vs padding fc1 to 128).
    w1, b1 = params["fc"][0]
    fc1 = w1.shape[1]
    w1r = w1.reshape(c_out_last, oh, ow, fc1)
    w1r = jnp.pad(w1r, ((0, 0), (0, H - oh), (0, W - ow), (0, 0)))
    kparams["w1"] = w1r.reshape(c_out_last * H * W, fc1)    # (c_out*H*W, fc1)
    kparams["b1"] = b1.reshape(1, fc1)

    # Remaining FC layers, unpadded.
    kparams["fc"] = [(w, b.reshape(1, w.shape[1])) for w, b in params["fc"][1:]]

    # Latent layer: pad only the (tiny) output lanes to 128 so outputs / softmax are
    # full-width lane-dense slabs.
    wl, bl = params["latent"]
    latp = _round_up(latent_dim, 128)
    kparams["wlat"] = jnp.pad(wl, ((0, 0), (0, latp - latent_dim)))
    kparams["blat"] = jnp.pad(bl, (0, latp - latent_dim)).reshape(1, latp)

    meta = {"conv_ksizes": tuple(conv_ksizes), "latent_dim": latent_dim}
    return kparams, meta


# ----------------------------------------------------------------------------
# Forward builder (everything, including the pallas_call, lives under jax.jit)
# ----------------------------------------------------------------------------
def make_forward(meta):
    latent_dim = meta["latent_dim"]
    conv_ksizes = meta["conv_ksizes"]

    def forward(x, kparams, gumbel, inv_temp):
        B, C, H, W = x.shape
        hw = H * W
        b_pad = _round_up(max(B, 1), 8)
        latp = kparams["wlat"].shape[1]

        # Static shift / column schedule for the flat-batch conv stack.
        maxshifts = [(kh - 1) * W + (kw - 1) for kh, kw in conv_ksizes]
        v0 = _round_up(B * hw + sum(maxshifts), 128)
        conv_meta = []
        v = v0
        for (kh, kw), ms in zip(conv_ksizes, maxshifts):
            shifts = tuple(dy * W + dx for dy in range(kh) for dx in range(kw))
            v_out = v - ms
            conv_meta.append((shifts, v_out))
            v = v_out
        conv_meta = tuple(conv_meta)

        # Input prep: NCHW -> (C, B*H*W) flat layout + zero tail pad (tiny XLA ops).
        x_flat = jnp.transpose(x.reshape(B, C, hw), (1, 0, 2)).reshape(C, B * hw)
        x_prep = jnp.pad(x_flat, ((0, 0), (0, v0 - B * hw)))

        # Gumbel noise, padded; pad lanes (and pad rows) carry -1e30 so the in-kernel
        # softmax needs no explicit lane mask.
        gum_p = jnp.full((b_pad, latp), -1e30, jnp.float32)
        gum_p = gum_p.at[:B, :latent_dim].set(gumbel.astype(jnp.float32))

        inv_t = jnp.asarray(inv_temp, jnp.float32).reshape(1)

        vmem = pl.BlockSpec(memory_space=pltpu.MemorySpace.VMEM)
        smem = pl.BlockSpec(memory_space=pltpu.MemorySpace.SMEM)

        operands = [inv_t, x_prep]
        in_specs = [smem, vmem]
        for taps, cb in kparams["conv"]:
            operands += [taps, cb]
            in_specs += [vmem, vmem]
        operands += [kparams["w1"], kparams["b1"]]
        in_specs += [vmem, vmem]
        for w, b in kparams["fc"]:
            operands += [w, b]
            in_specs += [vmem, vmem]
        operands += [kparams["wlat"], kparams["blat"], gum_p]
        in_specs += [vmem, vmem, vmem]

        cfg = dict(B=B, b_pad=b_pad, hw=hw, conv_meta=conv_meta,
                   n_extra_fc=len(kparams["fc"]))

        reparam_p, latent_p = pl.pallas_call(
            partial(_cat_vae_kernel, cfg=cfg),
            out_shape=(jax.ShapeDtypeStruct((b_pad, latp), jnp.float32),
                       jax.ShapeDtypeStruct((b_pad, latp), jnp.float32)),
            in_specs=in_specs,
            out_specs=(vmem, vmem),
        )(*operands)

        return reparam_p[:B, :latent_dim], latent_p[:B, :latent_dim]

    return forward


def sample_gumbel(key, shape, eps=1e-20):
    u = jax.random.uniform(key, shape, jnp.float32)
    return -jnp.log(-jnp.log(u + eps) + eps)


# ----------------------------------------------------------------------------
# Pure-JAX reference (mirrors the PyTorch module) for a correctness check
# ----------------------------------------------------------------------------
def reference_forward(x, params, gumbel, temperature):
    hi = jax.lax.Precision.HIGHEST
    h = x
    for w, b in params["conv"]:
        h = jax.lax.conv_general_dilated(
            h, w, (1, 1), "VALID",
            dimension_numbers=("NCHW", "OIHW", "NCHW"), precision=hi)
        h = jax.nn.relu(h + b.reshape(1, -1, 1, 1))
    h = h.reshape(h.shape[0], -1)                       # PyTorch Flatten (channel-major)
    for w, b in params["fc"]:
        h = jax.nn.relu(jnp.dot(h, w, precision=hi) + b)
    wl, bl = params["latent"]
    latent = jnp.dot(h, wl, precision=hi) + bl
    reparam = jax.nn.softmax((latent + gumbel) / temperature, axis=-1)
    return reparam, latent


# ----------------------------------------------------------------------------
if __name__ == "__main__":
    # Small config consistent with the module's constructor.
    B, C, H, W = 2, 4, 16, 16
    conv_layers = [8]
    conv_ksizes_cfg = [3]
    fc_layers = [32]
    latent_dim = 16
    initial_temperature = 10.0   # self.temperature used in forward

    root = jax.random.PRNGKey(0)
    k_x, k_p, k_g = jax.random.split(root, 3)

    x = jax.random.normal(k_x, (B, C, H, W), jnp.float32)
    params = init_params(k_p, C, conv_layers, conv_ksizes_cfg, fc_layers,
                         latent_dim, H, W)
    kparams, meta = prepare_params(params, H=H, W=W, latent_dim=latent_dim)
    gumbel_noise = sample_gumbel(k_g, (B, latent_dim))

    forward = jax.jit(make_forward(meta))
    reparam_latent, latent = forward(x, kparams, gumbel_noise,
                                     jnp.float32(1.0 / initial_temperature))
    jax.block_until_ready((reparam_latent, latent))

    assert reparam_latent.shape == (B, latent_dim)
    assert latent.shape == (B, latent_dim)
    assert bool(jnp.all(jnp.isfinite(reparam_latent)))
    assert bool(jnp.all(jnp.isfinite(latent)))
    # exact-divide softmax: rows sum to 1
    assert bool(jnp.allclose(jnp.sum(reparam_latent, axis=-1), 1.0, atol=1e-4))

    # Compare against the pure-JAX reference (loose tolerance covers MXU f32 rounding).
    ref_reparam, ref_latent = reference_forward(x, params, gumbel_noise,
                                                initial_temperature)
    assert bool(jnp.allclose(latent, ref_latent, rtol=2e-2, atol=2e-2))
    assert bool(jnp.allclose(reparam_latent, ref_reparam, rtol=2e-2, atol=2e-2))
    print("KERNEL_OK")
</pallas_src>

<mosaic_0001>
module attributes {stable_mosaic.version = 11 : i64} {
  func.func @_cat_vae_kernel(%arg0: memref<1xf32, #tpu.memory_space<smem>>, %arg1: memref<4x640xf32, #tpu.memory_space<vmem>>, %arg2: memref<8x36xf32, #tpu.memory_space<vmem>>, %arg3: memref<8x1xf32, #tpu.memory_space<vmem>>, %arg4: memref<2048x32xf32, #tpu.memory_space<vmem>>, %arg5: memref<1x32xf32, #tpu.memory_space<vmem>>, %arg6: memref<32x128xf32, #tpu.memory_space<vmem>>, %arg7: memref<1x128xf32, #tpu.memory_space<vmem>>, %arg8: memref<8x128xf32, #tpu.memory_space<vmem>>, %arg9: memref<8x128xf32, #tpu.memory_space<vmem>>, %arg10: memref<8x128xf32, #tpu.memory_space<vmem>>) attributes {dimension_semantics = [], scalar_prefetch = 0 : i64, scratch_operands = 0 : i64, tpu.core_type = #tpu.core_type<tc>} {
    %c0 = arith.constant 0 : index
    %c0_0 = arith.constant 0 : index
    %0 = vector.load %arg1[%c0, %c0_0] : memref<4x640xf32, #tpu.memory_space<vmem>>, vector<4x640xf32>
    %1 = vector.extract_strided_slice %0 {offsets = [0, 0], sizes = [4, 606], strides = [1, 1]} : vector<4x640xf32> to vector<4x606xf32>
    %2 = vector.extract_strided_slice %0 {offsets = [0, 1], sizes = [4, 606], strides = [1, 1]} : vector<4x640xf32> to vector<4x606xf32>
    %3 = vector.extract_strided_slice %0 {offsets = [0, 2], sizes = [4, 606], strides = [1, 1]} : vector<4x640xf32> to vector<4x606xf32>
    %4 = vector.extract_strided_slice %0 {offsets = [0, 16], sizes = [4, 606], strides = [1, 1]} : vector<4x640xf32> to vector<4x606xf32>
    %5 = vector.extract_strided_slice %0 {offsets = [0, 17], sizes = [4, 606], strides = [1, 1]} : vector<4x640xf32> to vector<4x606xf32>
    %6 = vector.extract_strided_slice %0 {offsets = [0, 18], sizes = [4, 606], strides = [1, 1]} : vector<4x640xf32> to vector<4x606xf32>
    %7 = vector.extract_strided_slice %0 {offsets = [0, 32], sizes = [4, 606], strides = [1, 1]} : vector<4x640xf32> to vector<4x606xf32>
    %8 = vector.extract_strided_slice %0 {offsets = [0, 33], sizes = [4, 606], strides = [1, 1]} : vector<4x640xf32> to vector<4x606xf32>
    %9 = vector.extract_strided_slice %0 {offsets = [0, 34], sizes = [4, 606], strides = [1, 1]} : vector<4x640xf32> to vector<4x606xf32>
    %10 = tpu.concatenate %1, %2, %3, %4, %5, %6, %7, %8, %9 in 0 : vector<4x606xf32>, vector<4x606xf32>, vector<4x606xf32>, vector<4x606xf32>, vector<4x606xf32>, vector<4x606xf32>, vector<4x606xf32>, vector<4x606xf32>, vector<4x606xf32> -> vector<36x606xf32>
    %c0_1 = arith.constant 0 : index
    %c0_2 = arith.constant 0 : index
    %11 = vector.load %arg2[%c0_1, %c0_2] : memref<8x36xf32, #tpu.memory_space<vmem>>, vector<8x36xf32>
    %cst = arith.constant dense<0.000000e+00> : vector<8x606xf32>
    %12 = tpu.matmul %11, %10, %cst {dimension_numbers = #tpu.dot_dimension_numbers<[1], [0], [0], [1], [0, 0, 1, 1], [], []>} : vector<8x36xf32>, vector<36x606xf32>, vector<8x606xf32> -> vector<8x606xf32>
    %c0_3 = arith.constant 0 : index
    %c0_4 = arith.constant 0 : index
    %13 = vector.load %arg3[%c0_3, %c0_4] : memref<8x1xf32, #tpu.memory_space<vmem>>, vector<8x1xf32>
    %14 = vector.broadcast %13 : vector<8x1xf32> to vector<8x606xf32>
    %15 = arith.addf %12, %14 : vector<8x606xf32>
    %cst_5 = arith.constant 0.000000e+00 : f32
    %16 = vector.broadcast %cst_5 : f32 to vector<8x606xf32>
    %17 = arith.maximumf %15, %16 : vector<8x606xf32>
    %18 = vector.extract_strided_slice %17 {offsets = [0, 0], sizes = [1, 256], strides = [1, 1]} : vector<8x606xf32> to vector<1x256xf32>
    %19 = vector.extract_strided_slice %17 {offsets = [1, 0], sizes = [1, 256], strides = [1, 1]} : vector<8x606xf32> to vector<1x256xf32>
    %20 = vector.extract_strided_slice %17 {offsets = [2, 0], sizes = [1, 256], strides = [1, 1]} : vector<8x606xf32> to vector<1x256xf32>
    %21 = vector.extract_strided_slice %17 {offsets = [3, 0], sizes = [1, 256], strides = [1, 1]} : vector<8x606xf32> to vector<1x256xf32>
    %22 = vector.extract_strided_slice %17 {offsets = [4, 0], sizes = [1, 256], strides = [1, 1]} : vector<8x606xf32> to vector<1x256xf32>
    %23 = vector.extract_strided_slice %17 {offsets = [5, 0], sizes = [1, 256], strides = [1, 1]} : vector<8x606xf32> to vector<1x256xf32>
    %24 = vector.extract_strided_slice %17 {offsets = [6, 0], sizes = [1, 256], strides = [1, 1]} : vector<8x606xf32> to vector<1x256xf32>
    %25 = vector.extract_strided_slice %17 {offsets = [7, 0], sizes = [1, 256], strides = [1, 1]} : vector<8x606xf32> to vector<1x256xf32>
    %26 = tpu.concatenate %18, %19, %20, %21, %22, %23, %24, %25 in 1 : vector<1x256xf32>, vector<1x256xf32>, vector<1x256xf32>, vector<1x256xf32>, vector<1x256xf32>, vector<1x256xf32>, vector<1x256xf32>, vector<1x256xf32> -> vector<1x2048xf32>
    %27 = vector.extract_strided_slice %17 {offsets = [0, 256], sizes = [1, 256], strides = [1, 1]} : vector<8x606xf32> to vector<1x256xf32>
    %28 = vector.extract_strided_slice %17 {offsets = [1, 256], sizes = [1, 256], strides = [1, 1]} : vector<8x606xf32> to vector<1x256xf32>
    %29 = vector.extract_strided_slice %17 {offsets = [2, 256], sizes = [1, 256], strides = [1, 1]} : vector<8x606xf32> to vector<1x256xf32>
    %30 = vector.extract_strided_slice %17 {offsets = [3, 256], sizes = [1, 256], strides = [1, 1]} : vector<8x606xf32> to vector<1x256xf32>
    %31 = vector.extract_strided_slice %17 {offsets = [4, 256], sizes = [1, 256], strides = [1, 1]} : vector<8x606xf32> to vector<1x256xf32>
    %32 = vector.extract_strided_slice %17 {offsets = [5, 256], sizes = [1, 256], strides = [1, 1]} : vector<8x606xf32> to vector<1x256xf32>
    %33 = vector.extract_strided_slice %17 {offsets = [6, 256], sizes = [1, 256], strides = [1, 1]} : vector<8x606xf32> to vector<1x256xf32>
    %34 = vector.extract_strided_slice %17 {offsets = [7, 256], sizes = [1, 256], strides = [1, 1]} : vector<8x606xf32> to vector<1x256xf32>
    %35 = tpu.concatenate %27, %28, %29, %30, %31, %32, %33, %34 in 1 : vector<1x256xf32>, vector<1x256xf32>, vector<1x256xf32>, vector<1x256xf32>, vector<1x256xf32>, vector<1x256xf32>, vector<1x256xf32>, vector<1x256xf32> -> vector<1x2048xf32>
    %cst_6 = arith.constant 0.000000e+00 : f32
    %36 = vector.broadcast %cst_6 : f32 to vector<6x2048xf32>
    %37 = tpu.concatenate %26, %35, %36 in 0 : vector<1x2048xf32>, vector<1x2048xf32>, vector<6x2048xf32> -> vector<8x2048xf32>
    %c0_7 = arith.constant 0 : index
    %c0_8 = arith.constant 0 : index
    %38 = vector.load %arg4[%c0_7, %c0_8] : memref<2048x32xf32, #tpu.memory_space<vmem>>, vector<2048x32xf32>
    %cst_9 = arith.constant dense<0.000000e+00> : vector<8x32xf32>
    %39 = tpu.matmul %37, %38, %cst_9 {dimension_numbers = #tpu.dot_dimension_numbers<[1], [0], [0], [1], [0, 0, 1, 1], [], []>} : vector<8x2048xf32>, vector<2048x32xf32>, vector<8x32xf32> -> vector<8x32xf32>
    %c0_10 = arith.constant 0 : index
    %c0_11 = arith.constant 0 : index
    %40 = vector.load %arg5[%c0_10, %c0_11] : memref<1x32xf32, #tpu.memory_space<vmem>>, vector<1x32xf32>
    %41 = vector.broadcast %40 : vector<1x32xf32> to vector<8x32xf32>
    %42 = arith.addf %39, %41 : vector<8x32xf32>
    %cst_12 = arith.constant 0.000000e+00 : f32
    %43 = vector.broadcast %cst_12 : f32 to vector<8x32xf32>
    %44 = arith.maximumf %42, %43 : vector<8x32xf32>
    %c0_13 = arith.constant 0 : index
    %c0_14 = arith.constant 0 : index
    %45 = vector.load %arg6[%c0_13, %c0_14] : memref<32x128xf32, #tpu.memory_space<vmem>>, vector<32x128xf32>
    %cst_15 = arith.constant dense<0.000000e+00> : vector<8x128xf32>
    %46 = tpu.matmul %44, %45, %cst_15 {dimension_numbers = #tpu.dot_dimension_numbers<[1], [0], [0], [1], [0, 0, 1, 1], [], []>} : vector<8x32xf32>, vector<32x128xf32>, vector<8x128xf32> -> vector<8x128xf32>
    %c0_16 = arith.constant 0 : index
    %c0_17 = arith.constant 0 : index
    %47 = vector.load %arg7[%c0_16, %c0_17] : memref<1x128xf32, #tpu.memory_space<vmem>>, vector<1x128xf32>
    %48 = vector.broadcast %47 : vector<1x128xf32> to vector<8x128xf32>
    %49 = arith.addf %46, %48 : vector<8x128xf32>
    %c0_18 = arith.constant 0 : index
    %c0_19 = arith.constant 0 : index
    %50 = vector.load %arg10[%c0_18, %c0_19] : memref<8x128xf32, #tpu.memory_space<vmem>>, vector<8x128xf32>
    tpu.vector_store %arg10[%c0_18, %c0_19], %49 {strides = array<i32>} : memref<8x128xf32, #tpu.memory_space<vmem>>, vector<8x128xf32>,
    %c0_20 = arith.constant 0 : index
    %c0_21 = arith.constant 0 : index
    %51 = vector.load %arg8[%c0_20, %c0_21] : memref<8x128xf32, #tpu.memory_space<vmem>>, vector<8x128xf32>
    %52 = arith.addf %49, %51 : vector<8x128xf32>
    %c0_22 = arith.constant 0 : index
    %53 = memref.load %arg0[%c0_22] : memref<1xf32, #tpu.memory_space<smem>>
    %54 = vector.broadcast %53 : f32 to vector<8x128xf32>
    %55 = arith.mulf %52, %54 : vector<8x128xf32>
    %cst_23 = arith.constant dense<0xFF800000> : vector<8xf32>
    %56 = vector.multi_reduction <maximumf>, %55, %cst_23 [1] : vector<8x128xf32> to vector<8xf32>
    %57 = vector.shape_cast %56 : vector<8xf32> to vector<8x1xf32>
    %58 = vector.broadcast %57 : vector<8x1xf32> to vector<8x128xf32>
    %59 = arith.subf %55, %58 : vector<8x128xf32>
    %60 = math.exp %59 : vector<8x128xf32>
    %cst_24 = arith.constant dense<0.000000e+00> : vector<8xf32>
    %61 = vector.multi_reduction <add>, %60, %cst_24 [1] : vector<8x128xf32> to vector<8xf32>
    %62 = vector.shape_cast %61 : vector<8xf32> to vector<8x1xf32>
    %63 = vector.broadcast %62 : vector<8x1xf32> to vector<8x128xf32>
    %64 = arith.divf %60, %63 : vector<8x128xf32>
    %c0_25 = arith.constant 0 : index
    %c0_26 = arith.constant 0 : index
    %65 = vector.load %arg9[%c0_25, %c0_26] : memref<8x128xf32, #tpu.memory_space<vmem>>, vector<8x128xf32>
    tpu.vector_store %arg9[%c0_25, %c0_26], %64 {strides = array<i32>} : memref<8x128xf32, #tpu.memory_space<vmem>>, vector<8x128xf32>,
    return
  }
}

</mosaic_0001>

<bundles_post_ra>
// kernel: forward.1
= control target key start
LH: loop header
LB: loop body
LE: loop exit
PB: predicated region body
PF: predicated region fallthrough
CT: control target
= control target key end

     0   :  { %s1775_s17 = smov 96   ;;  %s1776_s18 = smov 94   ;;  %v1783_v8 = vmov 0.0   ;;  %v1784_v9 = vmov 0   ;;  %vm191_vm0 = vcmask 769024   ;;  %vm196_vm1 = vcmask 1043456   ;;  %s2847_s1 = inlined_call_operand.vmem [shape: f32[4,640], index: 1, kind: input, shape index: {}]   ;;  %s2848_s3 = inlined_call_operand.vmem [shape: f32[8,1], index: 3, kind: input, shape index: {}]   ;;  %s2849_s2 = inlined_call_operand.vmem [shape: f32[8,36], index: 2, kind: input, shape index: {}]   ;;  %s2850_s4 = inlined_call_operand.vmem [shape: f32[2048,32], index: 4, kind: input, shape index: {}]   ;;  %s2851_s6 = inlined_call_operand.vmem [shape: f32[32,128], index: 6, kind: input, shape index: {}]   ;;  %s2852_s5 = inlined_call_operand.vmem [shape: f32[1,32], index: 5, kind: input, shape index: {}]   ;;  %s2853_s7 = inlined_call_operand.vmem [shape: f32[1,128], index: 7, kind: input, shape index: {}]   ;;  %s2854_s8 = inlined_call_operand.vmem [shape: f32[8,128], index: 8, kind: input, shape index: {}]   ;;  %s2855_s0 = inlined_call_operand.<no memory space> [shape: f32[1], index: 0, kind: input, shape index: {}]   ;;  %s2856_s10 = inlined_call_operand.vmem [shape: f32[8,128], index: 10, kind: output, shape index: {1}]   ;;  %s2857_s9 = inlined_call_operand.vmem [shape: f32[8,128], index: 9, kind: output, shape index: {0}]  }
   0x1   :  { %v37_v0 = vld [vmem:[%s2847_s1 + $0x10] sm:$0xf]  ;;  %v1847_v1 = vld [vmem:[%s2847_s1 + $0x8] sm:$0xff]  ;;  %s1777_s19 = smov 95   ;;  %v1859_v4 = vld [vmem:[%s2847_s1] sm:$0xff]  ;;  %s1778_s22 = smov 111   ;;  %367 = vmatprep.mubr.f32.mxu1 %v1783_v8  ;;  %296 = vmatprep.mubr.f32.mxu0 %v1783_v8 }
   0x2   :  { %151 = vrot.lane.b32.xlu1 %v37_v0, %s1775_s17  ;;  %189 = vrot.lane.b32.xlu0 %v37_v0, %s1776_s18  ;;  %v1851_v2 = vcombine.high %v1847_v1, %v1847_v1  ;;  %v47_v3 = vcombine.low %v37_v0, %v37_v0  ;;  %v46_v5 = vcombine.low %v1847_v1, %v1847_v1  ;;  %s1779_s1 = smov 110   ;;  %s1780_s23 = smov 126   ;;  %v214_v10 = vld [vmem:[%s2848_s3] sm:$0xff]  ;;  %vm172_vm2 = vcmask 777216  }
   0x3   :  { %v1867_v6 = vcombine.high %v1859_v4, %v1859_v4  ;;  %v45_v7 = vcombine.low %v1859_v4, %v1859_v4  ;;  %s1781_s24 = smov 112   ;;  %s1782_s25 = smov 127   ;;  %1765 = vset.pattern.permute.xlu0 %v1784_v9  ;;  %vm153_vm3 = vcmask 785408   ;;  %vm115_vm4 = vcmask 908288  }
   0x4   :  { %vm134_vm5 = vcmask 900096   ;;  %vm77_vm6 = vcmask 1031168   ;;  %vm96_vm7 = vcmask 916480   ;;  %vm58_vm8 = vcmask 1039360  }
   0x5   :  { %vm220_vm9 = vcmask 293888   ;;  %vm454_vm10 = vcmask 1040384   ;;  %vm471_vm11 = vcmask 1041408   ;;  %vm1785_vm12 = vmmov 0  }
   0x6   :  { %149 = vrot.lane.b32.xlu1 %v1851_v2, %s1775_s17  ;;  %187 = vrot.lane.b32.xlu0 %v1851_v2, %s1776_s18  ;;  %vm1323_vm13 = vcmask 261120  }
   0xa   :  { %170 = vrot.lane.b32.xlu1 %v47_v3, %s1777_s19  ;;  %168 = vrot.lane.b32.xlu0 %v1847_v1, %s1777_s19 }
   0xe   :  { %147 = vrot.lane.b32.xlu1 %v1847_v1, %s1775_s17  ;;  %185 = vrot.lane.b32.xlu0 %v1847_v1, %s1776_s18 }
  0x12   :  { %166 = vrot.lane.b32.xlu0 %v46_v5, %s1777_s19  ;;  %183 = vrot.lane.b32.xlu1 %v1867_v6, %s1776_s18 }
  0x16   :  { %111 = vrot.lane.b32.xlu0 %v1851_v2, %s1778_s22  ;;  %113 = vrot.lane.b32.xlu1 %v37_v0, %s1778_s22 }
  0x1a   :  { %130 = vrot.lane.b32.xlu0 %v1847_v1, %s1779_s1  ;;  %132 = vrot.lane.b32.xlu1 %v47_v3, %s1779_s1 }
  0x1e   :  { %145 = vrot.lane.b32.xlu0 %v1867_v6, %s1775_s17  ;;  %164 = vrot.lane.b32.xlu1 %v1859_v4, %s1777_s19 }
  0x22   :  { %181 = vrot.lane.b32.xlu0 %v1859_v4, %s1776_s18  ;;  %109 = vrot.lane.b32.xlu1 %v1847_v1, %s1778_s22 }
  0x26   :  { %128 = vrot.lane.b32.xlu0 %v46_v5, %s1779_s1  ;;  %143 = vrot.lane.b32.xlu1 %v1859_v4, %s1775_s17 }
  0x2a   :  { %162 = vrot.lane.b32.xlu0 %v45_v7, %s1777_s19  ;;  %73 = vrot.lane.b32.xlu1 %v1851_v2, %s1780_s23 }
  0x2e   :  { %75 = vrot.lane.b32.xlu0 %v37_v0, %s1780_s23  ;;  %92 = vrot.lane.b32.xlu1 %v1847_v1, %s1781_s24 }
  0x32   :  { %94 = vrot.lane.b32.xlu0 %v47_v3, %s1781_s24  ;;  %107 = vrot.lane.b32.xlu1 %v1867_v6, %s1778_s22 }
  0x36   :  { %126 = vrot.lane.b32.xlu0 %v1859_v4, %s1779_s1  ;;  %71 = vrot.lane.b32.xlu1 %v1847_v1, %s1780_s23 }
  0x3a   :  { %90 = vrot.lane.b32.xlu0 %v46_v5, %s1781_s24  ;;  %105 = vrot.lane.b32.xlu1 %v1859_v4, %s1778_s22 }
  0x3e   :  { %124 = vrot.lane.b32.xlu0 %v45_v7, %s1779_s1  ;;  %54 = vrot.lane.b32.xlu1 %v1847_v1, %s1782_s25 }
  0x42   :  { %56 = vrot.lane.b32.xlu0 %v47_v3, %s1782_s25  ;;  %69 = vrot.lane.b32.xlu1 %v1867_v6, %s1780_s23 }
  0x46   :  { %88 = vrot.lane.b32.xlu0 %v1859_v4, %s1781_s24  ;;  %52 = vrot.lane.b32.xlu1 %v46_v5, %s1782_s25 }
  0x4a   :  { %67 = vrot.lane.b32.xlu0 %v1859_v4, %s1780_s23  ;;  %86 = vrot.lane.b32.xlu1 %v45_v7, %s1781_s24 }
  0x4e   :  { %50 = vrot.lane.b32.xlu0 %v1859_v4, %s1782_s25  ;;  %48 = vrot.lane.b32.xlu1 %v45_v7, %s1782_s25 }
  0x52   :  { %217 = vperm.xlu0 %1765, %v214_v10  }
  0x74   :  { %v152_v11 = vpop.permute.xlu1 %151  ;;  %v190_v12 = vpop.permute.xlu0 %189 }
  0x78   :  { %v150_v13 = vpop.permute.xlu1 %149  ;;  %v188_v14 = vpop.permute.xlu0 %187 }
  0x79   :  { %v195_v15 = vsel %vm191_vm0, %v188_v14, %v190_v12  ;;  %v157_v21 = vsel %vm153_vm3, %v150_v13, %v152_v11 }
  0x7a   :  { %1424 = vmatprep.subr.msk.mxu1 %vm196_vm1, %v195_v15 }
  0x7c   :  { %v171_v16 = vpop.permute.xlu1 %170  ;;  %v169_v17 = vpop.permute.xlu0 %168 }
  0x7d   :  { %v176_v18 = vsel %vm172_vm2, %v169_v17, %v171_v16 }
  0x7e   :  { %v212_v23 = vsel %vm196_vm1, %v157_v21, %v176_v18 }
  0x80   :  { %v148_v19 = vpop.permute.xlu1 %147  ;;  %v186_v20 = vpop.permute.xlu0 %185 }
  0x81   :  { %v194_v22 = vsel %vm191_vm0, %v186_v20, %v188_v14  ;;  %v156_v26 = vsel %vm153_vm3, %v148_v19, %v150_v13 }
  0x82   :  { %1425 = vmatpush1.msk.msra.mxu1 %vm196_vm1, %v194_v22 }
  0x83   :  { %327 = vmatprep.subr.mxu1 %v212_v23 }
  0x84   :  { %v167_v24 = vpop.permute.xlu0 %166  ;;  %v184_v25 = vpop.permute.xlu1 %183 }
  0x85   :  { %v175_v27 = vsel %vm172_vm2, %v167_v24, %v169_v17  ;;  %v193_v28 = vsel %vm191_vm0, %v184_v25, %v186_v20 }
  0x86   :  { %1421 = vmatprep.subr.msk.mxu0 %vm196_vm1, %v193_v28  ;;  %v211_v29 = vsel %vm196_vm1, %v156_v26, %v175_v27  ;;  %v213_v27 = vld [vmem:[%s2849_s2] sm:$0xff]  ;;  %v551_v28 = vld [vmem:[%s2850_s4 + $0x1f8] sm:$0xff] }
  0x87   :  { %328 = vmatpush1.msra.mxu1 %v211_v29 }
  0x88   :  { %v112_v30 = vpop.permute.xlu0 %111  ;;  %v114_v31 = vpop.permute.xlu1 %113 }
  0x89   :  { %v119_v34 = vsel %vm115_vm4, %v112_v30, %v114_v31  ;;  %v550_v31 = vld [vmem:[%s2850_s4 + $0x1f0] sm:$0xff] }
  0x8c   :  { %v131_v32 = vpop.permute.xlu0 %130  ;;  %v133_v33 = vpop.permute.xlu1 %132 }
  0x8d   :  { %v138_v35 = vsel %vm134_vm5, %v131_v32, %v133_v33 }
  0x8e   :  { %v208_v36 = vsel %vm196_vm1, %v119_v34, %v138_v35  ;;  %v534_v34 = vld [vmem:[%s2850_s4 + $0x170] sm:$0xff] }
  0x8f   :  { %329 = vmatprep.subr.mxu1 %v208_v36  ;;  %v549_v36 = vld [vmem:[%s2850_s4 + $0x1e8] sm:$0xff] }
  0x90   :  { %v146_v37 = vpop.permute.xlu0 %145  ;;  %v165_v38 = vpop.permute.xlu1 %164 }
  0x91   :  { %v155_v39 = vsel %vm153_vm3, %v146_v37, %v148_v19  ;;  %v174_v40 = vsel %vm172_vm2, %v165_v38, %v167_v24 }
  0x92   :  { %v210_v44 = vsel %vm196_vm1, %v155_v39, %v174_v40  ;;  %v548_v39 = vld [vmem:[%s2850_s4 + $0x1e0] sm:$0xff] }
  0x94   :  { %v182_v41 = vpop.permute.xlu0 %181  ;;  %v110_v42 = vpop.permute.xlu1 %109 }
  0x95   :  { %v192_v43 = vsel %vm191_vm0, %v182_v41, %v184_v25  ;;  %v118_v47 = vsel %vm115_vm4, %v110_v42, %v112_v30  ;;  %v535_v30 = vld [vmem:[%s2850_s4 + $0x178] sm:$0xff] }
  0x96   :  { %1422 = vmatpush1.msk.msra.mxu0 %vm196_vm1, %v192_v43 }
  0x97   :  { %256 = vmatprep.subr.mxu0 %v210_v44 }
  0x98   :  { %v129_v45 = vpop.permute.xlu0 %128  ;;  %v144_v46 = vpop.permute.xlu1 %143 }
  0x99   :  { %v137_v48 = vsel %vm134_vm5, %v129_v45, %v131_v32  ;;  %v154_v52 = vsel %vm153_vm3, %v144_v46, %v146_v37 }
  0x9a   :  { %v207_v49 = vsel %vm196_vm1, %v118_v47, %v137_v48  ;;  %v519_v48 = vld [vmem:[%s2850_s4 + $0xf8] sm:$0xff] }
  0x9b   :  { %330 = vmatpush1.msra.mxu1 %v207_v49  ;;  %v503_v49 = vld [vmem:[%s2850_s4 + $0x78] sm:$0xff] }
  0x9c   :  { %v163_v50 = vpop.permute.xlu0 %162  ;;  %v74_v51 = vpop.permute.xlu1 %73 }
  0x9d   :  { %v173_v53 = vsel %vm172_vm2, %v163_v50, %v165_v38  ;;  %v533_v38 = vld [vmem:[%s2850_s4 + $0x168] sm:$0xff]  ;;  %v531_v50 = vld [vmem:[%s2850_s4 + $0x158] sm:$0xff] }
  0x9e   :  { %v209_v54 = vsel %vm196_vm1, %v154_v52, %v173_v53  ;;  %v530_v52 = vld [vmem:[%s2850_s4 + $0x150] sm:$0xff]  ;;  %v517_v53 = vld [vmem:[%s2850_s4 + $0xe8] sm:$0xff] }
  0x9f   :  { %257 = vmatpush1.msra.mxu0 %v209_v54  ;;  %v545_v54 = vld [vmem:[%s2850_s4 + $0x1c8] sm:$0xff] }
  0xa0   :  { %v76_v55 = vpop.permute.xlu0 %75  ;;  %v93_v56 = vpop.permute.xlu1 %92 }
  0xa1   :  { %v81_v59 = vsel %vm77_vm6, %v74_v51, %v76_v55  ;;  %v501_v55 = vld [vmem:[%s2850_s4 + $0x68] sm:$0xff] }
  0xa4   :  { %v95_v57 = vpop.permute.xlu0 %94  ;;  %v108_v58 = vpop.permute.xlu1 %107 }
  0xa5   :  { %v100_v60 = vsel %vm96_vm7, %v93_v56, %v95_v57  ;;  %v117_v0 = vsel %vm115_vm4, %v108_v58, %v110_v42  ;;  %v532_v42 = vld [vmem:[%s2850_s4 + $0x160] sm:$0xff] }
  0xa6   :  { %v204_v61 = vsel %vm196_vm1, %v81_v59, %v100_v60  ;;  %v516_v57 = vld [vmem:[%s2850_s4 + $0xe0] sm:$0xff] }
  0xa7   :  { %331 = vmatprep.subr.mxu1 %v204_v61  ;;  %v500_v59 = vld [vmem:[%s2850_s4 + $0x60] sm:$0xff]  ;;  %v515_v61 = vld [vmem:[%s2850_s4 + $0xd8] sm:$0xff] }
  0xa8   :  { %v127_v62 = vpop.permute.xlu0 %126  ;;  %v72_v63 = vpop.permute.xlu1 %71  ;;  %v528_v60 = vld [vmem:[%s2850_s4 + $0x140] sm:$0xff] }
  0xa9   :  { %v136_v3 = vsel %vm134_vm5, %v127_v62, %v129_v45  ;;  %v80_v10 = vsel %vm77_vm6, %v72_v63, %v74_v51  ;;  %v547_v45 = vld [vmem:[%s2850_s4 + $0x1d8] sm:$0xff]  ;;  %v502_v51 = vld [vmem:[%s2850_s4 + $0x70] sm:$0xff] }
  0xaa   :  { %v206_v5 = vsel %vm196_vm1, %v117_v0, %v136_v3  ;;  %v527_v0 = vld [vmem:[%s2850_s4 + $0x138] sm:$0xff]  ;;  %v514_v3 = vld [vmem:[%s2850_s4 + $0xd0] sm:$0xff] }
  0xab   :  { %258 = vmatprep.subr.mxu0 %v206_v5  ;;  %v498_v5 = vld [vmem:[%s2850_s4 + $0x50] sm:$0xff] }
  0xac   :  { %v91_v7 = vpop.permute.xlu0 %90  ;;  %v106_v9 = vpop.permute.xlu1 %105 }
  0xad   :  { %v99_v11 = vsel %vm96_vm7, %v91_v7, %v93_v56  ;;  %v116_v15 = vsel %vm115_vm4, %v106_v9, %v108_v58  ;;  %v529_v56 = vld [vmem:[%s2850_s4 + $0x148] sm:$0xff]  ;;  %v544_v58 = vld [vmem:[%s2850_s4 + $0x1c0] sm:$0xff] }
  0xae   :  { %v203_v12 = vsel %vm196_vm1, %v80_v10, %v99_v11  ;;  %v497_v9 = vld [vmem:[%s2850_s4 + $0x48] sm:$0xff]  ;;  %v512_v10 = vld [vmem:[%s2850_s4 + $0xc0] sm:$0xff] }
  0xaf   :  { %332 = vmatpush1.msra.mxu1 %v203_v12  ;;  %v496_v11 = vld [vmem:[%s2850_s4 + $0x40] sm:$0xff]  ;;  %v511_v12 = vld [vmem:[%s2850_s4 + $0xb8] sm:$0xff] }
  0xb0   :  { %v125_v13 = vpop.permute.xlu0 %124  ;;  %v55_v14 = vpop.permute.xlu1 %54 }
  0xb1   :  { %v135_v16 = vsel %vm134_vm5, %v125_v13, %v127_v62  ;;  %v543_v62 = vld [vmem:[%s2850_s4 + $0x1b8] sm:$0xff] }
  0xb2   :  { %v205_v17 = vsel %vm196_vm1, %v116_v15, %v135_v16  ;;  %v495_v13 = vld [vmem:[%s2850_s4 + $0x38] sm:$0xff]  ;;  %v494_v15 = vld [vmem:[%s2850_s4 + $0x30] sm:$0xff]  ;;  %v509_v16 = vld [vmem:[%s2850_s4 + $0xa8] sm:$0xff] }
  0xb3   :  { %259 = vmatpush1.msra.mxu0 %v205_v17  ;;  %v542_v17 = vld [vmem:[%s2850_s4 + $0x1b0] sm:$0xff] }
  0xb4   :  { %v57_v18 = vpop.permute.xlu0 %56  ;;  %v70_v19 = vpop.permute.xlu1 %69 }
  0xb5   :  { %v62_v20 = vsel %vm58_vm8, %v55_v14, %v57_v18  ;;  %v79_v24 = vsel %vm77_vm6, %v70_v19, %v72_v63  ;;  %v499_v63 = vld [vmem:[%s2850_s4 + $0x58] sm:$0xff]  ;;  %v493_v18 = vld [vmem:[%s2850_s4 + $0x28] sm:$0xff] }
  0xb6   :  { %v200_v21 = vsel %vm196_vm1, %v1851_v2, %v62_v20  ;;  %v508_v20 = vld [vmem:[%s2850_s4 + $0xa0] sm:$0xff] }
  0xb7   :  { %333 = vmatprep.subr.mxu1 %v200_v21  ;;  %v541_v21 = vld [vmem:[%s2850_s4 + $0x1a8] sm:$0xff] }
  0xb8   :  { %v89_v22 = vpop.permute.xlu0 %88  ;;  %v53_v23 = vpop.permute.xlu1 %52 }
  0xb9   :  { %v98_v25 = vsel %vm96_vm7, %v89_v22, %v91_v7  ;;  %v61_v26 = vsel %vm58_vm8, %v53_v23, %v55_v14  ;;  %v513_v7 = vld [vmem:[%s2850_s4 + $0xc8] sm:$0xff]  ;;  %v510_v14 = vld [vmem:[%s2850_s4 + $0xb0] sm:$0xff] }
  0xba   :  { %v202_v2 = vsel %vm196_vm1, %v79_v24, %v98_v25  ;;  %v199_v29 = vsel %vm196_vm1, %v1847_v1, %v61_v26  ;;  %v507_v24 = vld [vmem:[%s2850_s4 + $0x98] sm:$0xff]  ;;  %v540_v25 = vld [vmem:[%s2850_s4 + $0x1a0] sm:$0xff] }
  0xbb   :  { %260 = vmatprep.subr.mxu0 %v202_v2  ;;  %334 = vmatpush1.msra.mxu1 %v199_v29  ;;  %v491_v26 = vld [vmem:[%s2850_s4 + $0x18] sm:$0xff]  ;;  %v490_v29 = vld [vmem:[%s2850_s4 + $0x10] sm:$0xff] }
  0xbc   :  { %v68_v32 = vpop.permute.xlu0 %67  ;;  %v87_v33 = vpop.permute.xlu1 %86  ;;  %1426 = vmatmul.mubr.msk.f32.vlgmr.msra.gmra.mxu1 %vm220_vm9, %v213_v27  ;;  %1493 = vmatprep.subr.mxu1 %v551_v28  ;;  %v506_v28 = vld [vmem:[%s2850_s4 + $0x90] sm:$0xff]  ;;  %v539_v2 = vld [vmem:[%s2850_s4 + $0x198] sm:$0xff] }
  0xbd   :  { %v78_v1 = vsel %vm77_vm6, %v68_v32, %v70_v19  ;;  %v97_v35 = vsel %vm96_vm7, %v87_v33, %v89_v22  ;;  %1494 = vmatpush3.msra.mxu1 %v535_v30  ;;  %v526_v19 = vld [vmem:[%s2850_s4 + $0x130] sm:$0xff]  ;;  %v492_v22 = vld [vmem:[%s2850_s4 + $0x20] sm:$0xff]  ;;  %v523_v30 = vld [vmem:[%s2850_s4 + $0x118] sm:$0xff] }
  0xbe   :  { %v201_v37 = vsel %vm196_vm1, %v78_v1, %v97_v35  ;;  %1495 = vmatprep.subr.mxu1 %v550_v31  ;;  %v505_v31 = vld [vmem:[%s2850_s4 + $0x88] sm:$0xff]  ;;  %v538_v32 = vld [vmem:[%s2850_s4 + $0x190] sm:$0xff]  ;;  %v504_v1 = vld [vmem:[%s2850_s4 + $0x80] sm:$0xff] }
  0xbf   :  { %261 = vmatpush1.msra.mxu0 %v201_v37  ;;  %1496 = vmatpush3.msra.mxu1 %v534_v34  ;;  %v489_v33 = vld [vmem:[%s2850_s4 + $0x8] sm:$0xff]  ;;  %v522_v34 = vld [vmem:[%s2850_s4 + $0x110] sm:$0xff] }
  0xc0   :  { %v51_v40 = vpop.permute.xlu0 %50  ;;  %v49_v41 = vpop.permute.xlu1 %48  ;;  %1497 = vmatprep.subr.mxu1 %v549_v36  ;;  %v537_v35 = vld [vmem:[%s2850_s4 + $0x188] sm:$0xff]  ;;  %v488_v36 = vld [vmem:[%s2850_s4] sm:$0xff] }
  0xc1   :  { %v60_v43 = vsel %vm58_vm8, %v51_v40, %v53_v23  ;;  %v59_v44 = vsel %vm58_vm8, %v49_v41, %v51_v40  ;;  %1498 = vmatpush3.msra.mxu1 %v533_v38  ;;  %v525_v23 = vld [vmem:[%s2850_s4 + $0x128] sm:$0xff]  ;;  %v536_v38 = vld [vmem:[%s2850_s4 + $0x180] sm:$0xff]  ;;  %v615_v41 = vld [vmem:[%s2850_s4 + $0x3f8] sm:$0xff] }
  0xc2   :  { %v198_v46 = vsel %vm196_vm1, %v1867_v6, %v60_v43  ;;  %v197_v47 = vsel %vm196_vm1, %v1859_v4, %v59_v44  ;;  %1499 = vmatprep.subr.mxu1 %v548_v39  ;;  %v518_v4 = vld [vmem:[%s2850_s4 + $0xf0] sm:$0xff]  ;;  %v521_v37 = vld [vmem:[%s2850_s4 + $0x108] sm:$0xff]  ;;  %v583_v39 = vld [vmem:[%s2850_s4 + $0x2f8] sm:$0xff] }
  0xc3   :  { %262 = vmatprep.subr.mxu0 %v198_v46  ;;  %1500 = vmatpush3.msra.mxu1 %v532_v42  ;;  %v546_v6 = vld [vmem:[%s2850_s4 + $0x1d0] sm:$0xff]  ;;  %v520_v40 = vld [vmem:[%s2850_s4 + $0x100] sm:$0xff] }
  0xc4   :  { %263 = vmatpush1.msra.mxu0 %v197_v47  ;;  %1501 = vmatprep.subr.mxu1 %v547_v45 }
  0xc5   :  { %1423 = vmatmul.mubr.msk.f32.vlgmr.msra.gmra.mxu0 %vm220_vm9, %v213_v27  ;;  %1458 = vmatprep.subr.mxu0 %v519_v48  ;;  %v524_v27 = vld [vmem:[%s2850_s4 + $0x120] sm:$0xff] }
  0xc6   :  { %1459 = vmatpush3.msra.mxu0 %v503_v49  ;;  %1502 = vmatpush3.msra.mxu1 %v531_v50 }
  0xc7   :  { %1460 = vmatprep.subr.mxu0 %v518_v4  ;;  %1503 = vmatprep.subr.mxu1 %v546_v6 }
  0xc8   :  { %1461 = vmatpush3.msra.mxu0 %v502_v51  ;;  %1504 = vmatpush3.msra.mxu1 %v530_v52 }
  0xc9   :  { %1462 = vmatprep.subr.mxu0 %v517_v53  ;;  %1505 = vmatprep.subr.mxu1 %v545_v54 }
  0xca   :  { %1463 = vmatpush3.msra.mxu0 %v501_v55  ;;  %1506 = vmatpush3.msra.mxu1 %v529_v56 }
  0xcb   :  { %1464 = vmatprep.subr.mxu0 %v516_v57  ;;  %1507 = vmatprep.subr.mxu1 %v544_v58 }
  0xcc   :  { %1465 = vmatpush3.msra.mxu0 %v500_v59  ;;  %1508 = vmatpush3.msra.mxu1 %v528_v60 }
  0xcd   :  { %1466 = vmatprep.subr.mxu0 %v515_v61  ;;  %1509 = vmatprep.subr.mxu1 %v543_v62  ;;  %v218_v43 = vpop.permute.xlu0 %217  ;;  %v567_v62 = vld [vmem:[%s2850_s4 + $0x278] sm:$0xff] }
  0xce   :  { %1467 = vmatpush3.msra.mxu0 %v499_v63  ;;  %1510 = vmatpush3.msra.mxu1 %v527_v0 }
  0xcf   :  { %1468 = vmatprep.subr.mxu0 %v514_v3  ;;  %1511 = vmatprep.subr.mxu1 %v542_v17  ;;  %v599_v17 = vld [vmem:[%s2850_s4 + $0x378] sm:$0xff] }
  0xd0   :  { %1469 = vmatpush3.msra.mxu0 %v498_v5  ;;  %1512 = vmatpush3.msra.mxu1 %v526_v19 }
  0xd1   :  { %1470 = vmatprep.subr.mxu0 %v513_v7  ;;  %1513 = vmatprep.subr.mxu1 %v541_v21  ;;  %v582_v7 = vld [vmem:[%s2850_s4 + $0x2f0] sm:$0xff] }
  0xd2   :  { %1471 = vmatpush3.msra.mxu0 %v497_v9  ;;  %1514 = vmatpush3.msra.mxu1 %v525_v23 }
  0xd3   :  { %1472 = vmatprep.subr.mxu0 %v512_v10  ;;  %1515 = vmatprep.subr.mxu1 %v540_v25 }
  0xd4   :  { %1473 = vmatpush3.msra.mxu0 %v496_v11  ;;  %1516 = vmatpush3.msra.mxu1 %v524_v27 }
  0xd5   :  { %1474 = vmatprep.subr.mxu0 %v511_v12  ;;  %1517 = vmatprep.subr.mxu1 %v539_v2  ;;  %v598_v2 = vld [vmem:[%s2850_s4 + $0x370] sm:$0xff] }
  0xd6   :  { %1475 = vmatpush3.msra.mxu0 %v495_v13  ;;  %1518 = vmatpush3.msra.mxu1 %v523_v30 }
  0xd7   :  { %1476 = vmatprep.subr.mxu0 %v510_v14  ;;  %1519 = vmatprep.subr.mxu1 %v538_v32  ;;  %v566_v14 = vld [vmem:[%s2850_s4 + $0x270] sm:$0xff]  ;;  %v613_v32 = vld [vmem:[%s2850_s4 + $0x3e8] sm:$0xff] }
  0xd8   :  { %1477 = vmatpush3.msra.mxu0 %v494_v15  ;;  %1520 = vmatpush3.msra.mxu1 %v522_v34 }
  0xd9   :  { %1478 = vmatprep.subr.mxu0 %v509_v16  ;;  %1521 = vmatprep.subr.mxu1 %v537_v35  ;;  %v597_v35 = vld [vmem:[%s2850_s4 + $0x368] sm:$0xff] }
  0xda   :  { %1479 = vmatpush3.msra.mxu0 %v493_v18  ;;  %1522 = vmatpush3.msra.mxu1 %v521_v37  ;;  %v581_v18 = vld [vmem:[%s2850_s4 + $0x2e8] sm:$0xff]  ;;  %v612_v37 = vld [vmem:[%s2850_s4 + $0x3e0] sm:$0xff] }
  0xdb   :  { %1480 = vmatprep.subr.mxu0 %v508_v20  ;;  %1523 = vmatprep.subr.mxu1 %v536_v38  ;;  %v563_v38 = vld [vmem:[%s2850_s4 + $0x258] sm:$0xff] }
  0xdc   :  { %1481 = vmatpush3.msra.mxu0 %v492_v22  ;;  %1524 = vmatpush3.msra.mxu1 %v520_v40  ;;  %v578_v40 = vld [vmem:[%s2850_s4 + $0x2d0] sm:$0xff] }
  0xdd   :  { %1482 = vmatprep.subr.mxu0 %v507_v24  ;;  %1563 = vmatprep.subr.mxu1 %v615_v41  ;;  %v614_v24 = vld [vmem:[%s2850_s4 + $0x3f0] sm:$0xff]  ;;  %v611_v41 = vld [vmem:[%s2850_s4 + $0x3d8] sm:$0xff] }
  0xde   :  { %1483 = vmatpush3.msra.mxu0 %v491_v26 }
  0xdf   :  { %1484 = vmatprep.subr.mxu0 %v506_v28  ;;  %v565_v28 = vld [vmem:[%s2850_s4 + $0x268] sm:$0xff] }
  0xe0   :  { %1485 = vmatpush3.msra.mxu0 %v490_v29 }
  0xe1   :  { %1486 = vmatprep.subr.mxu0 %v505_v31  ;;  %v580_v31 = vld [vmem:[%s2850_s4 + $0x2e0] sm:$0xff] }
  0xe2   :  { %1487 = vmatpush3.msra.mxu0 %v489_v33 }
  0xe3   :  { %1488 = vmatprep.subr.mxu0 %v504_v1  ;;  %v564_v1 = vld [vmem:[%s2850_s4 + $0x260] sm:$0xff] }
  0xe4   :  { %1489 = vmatpush3.msra.mxu0 %v488_v36  ;;  %v579_v36 = vld [vmem:[%s2850_s4 + $0x2d8] sm:$0xff] }
  0xe5   :  { %1528 = vmatprep.subr.mxu0 %v583_v39  ;;  %v596_v39 = vld [vmem:[%s2850_s4 + $0x360] sm:$0xff] }
 0x17c   :  { %v369_v42 = vpop.f32.mrf.mxu1 }
 0x17d   :  { %v370_v45 = vadd.f32 %v369_v42, %v218_v43  ;;  %v562_v42 = vld [vmem:[%s2850_s4 + $0x250] sm:$0xff] }
 0x17e   :  { %v371_v44 = vpop.f32.mrf.mxu1 }
 0x17f   :  { %v372_v46 = vadd.f32 %v371_v44, %v218_v43  ;;  %v2154_v47 = vmax.f32 %v370_v45, 0.0  ;;  %v577_v44 = vld [vmem:[%s2850_s4 + $0x2c8] sm:$0xff]  ;;  %v610_v45 = vld [vmem:[%s2850_s4 + $0x3d0] sm:$0xff] }
 0x181   :  { %v2156_v49 = vmax.f32 %v372_v46, 0.0  ;;  %v422_v52 = vrot.slane %v2154_v47, 7  ;;  %v1433_v55 = vrot.slane %v2154_v47, 11  ;;  %v1435_v56 = vrot.slane %v2154_v47, 12  ;;  %v561_v46 = vld [vmem:[%s2850_s4 + $0x248] sm:$0xff] }
 0x182   :  { %v1437_v10 = vrot.slane %v2154_v47, 13 }
 0x183   :  { %v423_v54 = vrot.slane %v2156_v49, 7  ;;  %v1430_v57 = vrot.slane %v2156_v49, 9  ;;  %v1432_v9 = vrot.slane %v2156_v49, 10  ;;  %v436_v11 = vrot.slane %v422_v52, 7 }
 0x184   :  { %v1438_v20 = vrot.slane %v2156_v49, 13 }
 0x185   :  { %v298_v48 = vpop.f32.mrf.mxu0  ;;  %v437_v22 = vrot.slane %v423_v54, 7 }
 0x186   :  { %v299_v50 = vadd.f32 %v298_v48, %v218_v43  ;;  %v594_v48 = vld [vmem:[%s2850_s4 + $0x350] sm:$0xff] }
 0x187   :  { %v300_v4 = vpop.f32.mrf.mxu0 }
 0x188   :  { %v2158_v6 = vmax.f32 %v299_v50, 0.0  ;;  %v301_v51 = vadd.f32 %v300_v4, %v218_v43  ;;  %v595_v43 = vld [vmem:[%s2850_s4 + $0x358] sm:$0xff]  ;;  %v576_v50 = vld [vmem:[%s2850_s4 + $0x2c0] sm:$0xff]  ;;  %v609_v4 = vld [vmem:[%s2850_s4 + $0x3c8] sm:$0xff] }
 0x18a   :  { %v2161_v53 = vmax.f32 %v301_v51, 0.0  ;;  %v380_v58 = vrot.slane %v2158_v6, 1  ;;  %v392_v59 = vrot.slane %v2158_v6, 4  ;;  %v396_v60 = vrot.slane %v2158_v6, 5  ;;  %v560_v51 = vld [vmem:[%s2850_s4 + $0x240] sm:$0xff] }
 0x18b   :  { %v400_v3 = vrot.slane %v2158_v6, 6  ;;  %v455_v5 = vsel %vm454_vm10, %v2158_v6, %v422_v52  ;;  %v404_v27 = vrot.slane %v2158_v6, 7  ;;  %v593_v52 = vld [vmem:[%s2850_s4 + $0x348] sm:$0xff] }
 0x18c   :  { %v456_v61 = vsel %vm454_vm10, %v2161_v53, %v423_v54  ;;  %v381_v63 = vrot.slane %v2161_v53, 1  ;;  %v385_v0 = vrot.slane %v2161_v53, 2  ;;  %v389_v15 = vrot.slane %v2161_v53, 3  ;;  %v575_v54 = vld [vmem:[%s2850_s4 + $0x2b8] sm:$0xff] }
 0x18d   :  { %1440 = vmatprep.mubr.msk.f32.mxu0 %vm471_vm11, %v456_v61  ;;  %v2195_v16 = vsel %vm454_vm10, %v392_v59, %v1433_v55  ;;  %v401_v19 = vrot.slane %v2161_v53, 6  ;;  %v2207_v21 = vsel %vm454_vm10, %v396_v60, %v1435_v56  ;;  %v457_v23 = vsel %vm454_vm10, %v380_v58, %v2154_v47  ;;  %v608_v55 = vld [vmem:[%s2850_s4 + $0x3c0] sm:$0xff]  ;;  %v559_v56 = vld [vmem:[%s2850_s4 + $0x238] sm:$0xff]  ;;  %v574_v58 = vld [vmem:[%s2850_s4 + $0x2b0] sm:$0xff] }
 0x18e   :  { %1441 = vmatmul.mubr.msk.f32.vlgmr.msra.gmra.mxu0 %vm471_vm11, %v455_v5  ;;  %v458_v12 = vsel %vm454_vm10, %v381_v63, %v2156_v49  ;;  %v460_v13 = vsel %vm454_vm10, %v385_v0, %v1430_v57  ;;  %v405_v25 = vrot.slane %v2161_v53, 7  ;;  %v2217_v26 = vsel %vm454_vm10, %v400_v3, %v1437_v10  ;;  %v592_v57 = vld [vmem:[%s2850_s4 + $0x340] sm:$0xff]  ;;  %v607_v59 = vld [vmem:[%s2850_s4 + $0x3b8] sm:$0xff]  ;;  %v558_v60 = vld [vmem:[%s2850_s4 + $0x230] sm:$0xff] }
 0x18f   :  { %1529 = vmatpush3.msra.mxu0 %v567_v62  ;;  %1442 = vmatprep.mubr.msk.f32.mxu1 %vm471_vm11, %v458_v12  ;;  %v2228_v29 = vsel %vm454_vm10, %v401_v19, %v1438_v20  ;;  %v462_v30 = vsel %vm454_vm10, %v389_v15, %v1432_v9  ;;  %v2241_v34 = vsel %vm454_vm10, %v404_v27, %v436_v11  ;;  %v591_v61 = vld [vmem:[%s2850_s4 + $0x338] sm:$0xff]  ;;  %v573_v62 = vld [vmem:[%s2850_s4 + $0x2a8] sm:$0xff]  ;;  %v606_v63 = vld [vmem:[%s2850_s4 + $0x3b0] sm:$0xff] }
 0x190   :  { %1530 = vmatprep.subr.mxu0 %v582_v7  ;;  %1444 = vmatprep.mubr.msk.f32.mxu0 %vm471_vm11, %v460_v13  ;;  %v2238_v33 = vsel %vm454_vm10, %v405_v25, %v437_v22  ;;  %v557_v0 = vld [vmem:[%s2850_s4 + $0x228] sm:$0xff]  ;;  %v590_v3 = vld [vmem:[%s2850_s4 + $0x330] sm:$0xff]  ;;  %v572_v5 = vld [vmem:[%s2850_s4 + $0x2a0] sm:$0xff] }
 0x191   :  { %1443 = vmatmul.mubr.msk.f32.vlgmr.msra.gmra.mxu1 %vm471_vm11, %v457_v23  ;;  %1531 = vmatpush3.msra.mxu0 %v566_v14  ;;  %v605_v7 = vld [vmem:[%s2850_s4 + $0x3a8] sm:$0xff]  ;;  %v556_v9 = vld [vmem:[%s2850_s4 + $0x220] sm:$0xff]  ;;  %v571_v11 = vld [vmem:[%s2850_s4 + $0x298] sm:$0xff] }
 0x192   :  { %1564 = vmatpush3.msra.mxu1 %v599_v17  ;;  %1532 = vmatprep.subr.mxu0 %v581_v18  ;;  %v589_v10 = vld [vmem:[%s2850_s4 + $0x328] sm:$0xff]  ;;  %v604_v12 = vld [vmem:[%s2850_s4 + $0x3a0] sm:$0xff]  ;;  %v555_v13 = vld [vmem:[%s2850_s4 + $0x218] sm:$0xff] }
 0x193   :  { %1565 = vmatprep.subr.mxu1 %v614_v24  ;;  %1446 = vmatprep.mubr.msk.f32.mxu1 %vm471_vm11, %v462_v30  ;;  %v588_v14 = vld [vmem:[%s2850_s4 + $0x320] sm:$0xff]  ;;  %v570_v15 = vld [vmem:[%s2850_s4 + $0x290] sm:$0xff]  ;;  %v603_v17 = vld [vmem:[%s2850_s4 + $0x398] sm:$0xff] }
 0x194   :  { %1533 = vmatpush3.msra.mxu0 %v565_v28  ;;  %1566 = vmatpush3.msra.mxu1 %v598_v2  ;;  %v554_v18 = vld [vmem:[%s2850_s4 + $0x210] sm:$0xff]  ;;  %v587_v19 = vld [vmem:[%s2850_s4 + $0x318] sm:$0xff]  ;;  %v569_v20 = vld [vmem:[%s2850_s4 + $0x288] sm:$0xff]  ;;  %v384_v28 = vrot.slane %v2158_v6, 2 }
 0x195   :  { %1534 = vmatprep.subr.mxu0 %v580_v31  ;;  %1567 = vmatprep.subr.mxu1 %v613_v32  ;;  %v602_v22 = vld [vmem:[%s2850_s4 + $0x390] sm:$0xff]  ;;  %v553_v23 = vld [vmem:[%s2850_s4 + $0x208] sm:$0xff]  ;;  %v568_v25 = vld [vmem:[%s2850_s4 + $0x280] sm:$0xff]  ;;  %v1429_v31 = vrot.slane %v2154_v47, 9 }
 0x196   :  { %1535 = vmatpush3.msra.mxu0 %v564_v1  ;;  %1568 = vmatpush3.msra.mxu1 %v597_v35  ;;  %v586_v24 = vld [vmem:[%s2850_s4 + $0x310] sm:$0xff]  ;;  %v601_v27 = vld [vmem:[%s2850_s4 + $0x388] sm:$0xff]  ;;  %v552_v2 = vld [vmem:[%s2850_s4 + $0x200] sm:$0xff]  ;;  %v393_v1 = vrot.slane %v2161_v53, 4 }
 0x197   :  { %1536 = vmatprep.subr.mxu0 %v579_v36  ;;  %1569 = vmatprep.subr.mxu1 %v612_v37  ;;  %v585_v30 = vld [vmem:[%s2850_s4 + $0x308] sm:$0xff]  ;;  %v600_v32 = vld [vmem:[%s2850_s4 + $0x380] sm:$0xff]  ;;  %v647_v35 = vld [vmem:[%s2850_s4 + $0x4f8] sm:$0xff]  ;;  %v388_v37 = vrot.slane %v2158_v6, 3  ;;  %v397_v6 = vrot.slane %v2161_v53, 5 }
 0x198   :  { %1537 = vmatpush3.msra.mxu0 %v563_v38  ;;  %1570 = vmatpush3.msra.mxu1 %v596_v39  ;;  %v584_v36 = vld [vmem:[%s2850_s4 + $0x300] sm:$0xff]  ;;  %v459_v38 = vsel %vm454_vm10, %v384_v28, %v1429_v31  ;;  %v631_v39 = vld [vmem:[%s2850_s4 + $0x478] sm:$0xff]  ;;  %v654_v28 = vld [vmem:[%s2850_s4 + $0x530] sm:$0xff] }
 0x199   :  { %1538 = vmatprep.subr.mxu0 %v578_v40  ;;  %1571 = vmatprep.subr.mxu1 %v611_v41  ;;  %v1434_v40 = vrot.slane %v2156_v49, 11  ;;  %v1431_v41 = vrot.slane %v2154_v47, 10  ;;  %v663_v53 = vld [vmem:[%s2850_s4 + $0x578] sm:$0xff]  ;;  %v620_v31 = vld [vmem:[%s2850_s4 + $0x420] sm:$0xff] }
 0x19a   :  { %1539 = vmatpush3.msra.mxu0 %v562_v42  ;;  %1572 = vmatpush3.msra.mxu1 %v595_v43  ;;  %v646_v42 = vld [vmem:[%s2850_s4 + $0x4f0] sm:$0xff] }
 0x19b   :  { %1540 = vmatprep.subr.mxu0 %v577_v44  ;;  %1573 = vmatprep.subr.mxu1 %v610_v45  ;;  %v464_v43 = vsel %vm454_vm10, %v393_v1, %v1434_v40  ;;  %v679_v44 = vld [vmem:[%s2850_s4 + $0x5f8] sm:$0xff]  ;;  %v630_v45 = vld [vmem:[%s2850_s4 + $0x470] sm:$0xff]  ;;  %v461_v47 = vsel %vm454_vm10, %v388_v37, %v1431_v41  ;;  %v652_v37 = vld [vmem:[%s2850_s4 + $0x520] sm:$0xff] }
 0x19c   :  { %1541 = vmatpush3.msra.mxu0 %v561_v46  ;;  %1574 = vmatpush3.msra.mxu1 %v594_v48  ;;  %v1436_v46 = vrot.slane %v2156_v49, 12  ;;  %v645_v48 = vld [vmem:[%s2850_s4 + $0x4e8] sm:$0xff]  ;;  %v662_v49 = vld [vmem:[%s2850_s4 + $0x570] sm:$0xff]  ;;  %v635_v1 = vld [vmem:[%s2850_s4 + $0x498] sm:$0xff] }
 0x19d   :  { %1542 = vmatprep.subr.mxu0 %v576_v50  ;;  %1575 = vmatprep.subr.mxu1 %v609_v4  ;;  %v678_v50 = vld [vmem:[%s2850_s4 + $0x5f0] sm:$0xff]  ;;  %v651_v41 = vld [vmem:[%s2850_s4 + $0x518] sm:$0xff] }
 0x19e   :  { %1543 = vmatpush3.msra.mxu0 %v560_v51  ;;  %1576 = vmatpush3.msra.mxu1 %v593_v52  ;;  %v466_v4 = vsel %vm454_vm10, %v397_v6, %v1436_v46  ;;  %v629_v51 = vld [vmem:[%s2850_s4 + $0x468] sm:$0xff]  ;;  %v644_v52 = vld [vmem:[%s2850_s4 + $0x4e0] sm:$0xff]  ;;  %v618_v40 = vld [vmem:[%s2850_s4 + $0x410] sm:$0xff] }
 0x19f   :  { %1544 = vmatprep.subr.mxu0 %v575_v54  ;;  %1577 = vmatprep.subr.mxu1 %v608_v55  ;;  %v677_v54 = vld [vmem:[%s2850_s4 + $0x5e8] sm:$0xff]  ;;  %v628_v55 = vld [vmem:[%s2850_s4 + $0x460] sm:$0xff]  ;;  %v666_v6 = vld [vmem:[%s2850_s4 + $0x590] sm:$0xff] }
 0x1a0   :  { %1545 = vmatpush3.msra.mxu0 %v559_v56  ;;  %1578 = vmatpush3.msra.mxu1 %v592_v57  ;;  %v661_v56 = vld [vmem:[%s2850_s4 + $0x568] sm:$0xff]  ;;  %v643_v57 = vld [vmem:[%s2850_s4 + $0x4d8] sm:$0xff] }
 0x1a1   :  { %1546 = vmatprep.subr.mxu0 %v574_v58  ;;  %1579 = vmatprep.subr.mxu1 %v607_v59  ;;  %v676_v58 = vld [vmem:[%s2850_s4 + $0x5e0] sm:$0xff]  ;;  %v627_v59 = vld [vmem:[%s2850_s4 + $0x458] sm:$0xff]  ;;  %v649_v46 = vld [vmem:[%s2850_s4 + $0x508] sm:$0xff] }
 0x1a2   :  { %1547 = vmatpush3.msra.mxu0 %v558_v60  ;;  %1580 = vmatpush3.msra.mxu1 %v591_v61  ;;  %v660_v60 = vld [vmem:[%s2850_s4 + $0x560] sm:$0xff]  ;;  %v642_v61 = vld [vmem:[%s2850_s4 + $0x4d0] sm:$0xff] }
 0x1a3   :  { %1548 = vmatprep.subr.mxu0 %v573_v62  ;;  %1581 = vmatprep.subr.mxu1 %v606_v63  ;;  %v675_v62 = vld [vmem:[%s2850_s4 + $0x5d8] sm:$0xff]  ;;  %v626_v63 = vld [vmem:[%s2850_s4 + $0x450] sm:$0xff] }
 0x1a4   :  { %1549 = vmatpush3.msra.mxu0 %v557_v0  ;;  %1582 = vmatpush3.msra.mxu1 %v590_v3  ;;  %v659_v0 = vld [vmem:[%s2850_s4 + $0x558] sm:$0xff]  ;;  %v641_v3 = vld [vmem:[%s2850_s4 + $0x4c8] sm:$0xff] }
 0x1a5   :  { %1550 = vmatprep.subr.mxu0 %v572_v5  ;;  %1583 = vmatprep.subr.mxu1 %v605_v7  ;;  %v674_v5 = vld [vmem:[%s2850_s4 + $0x5d0] sm:$0xff]  ;;  %v625_v7 = vld [vmem:[%s2850_s4 + $0x448] sm:$0xff] }
 0x1a6   :  { %1551 = vmatpush3.msra.mxu0 %v556_v9  ;;  %1584 = vmatpush3.msra.mxu1 %v589_v10  ;;  %v658_v9 = vld [vmem:[%s2850_s4 + $0x550] sm:$0xff]  ;;  %v640_v10 = vld [vmem:[%s2850_s4 + $0x4c0] sm:$0xff] }
 0x1a7   :  { %1552 = vmatprep.subr.mxu0 %v571_v11  ;;  %1585 = vmatprep.subr.mxu1 %v604_v12  ;;  %v673_v11 = vld [vmem:[%s2850_s4 + $0x5c8] sm:$0xff]  ;;  %v624_v12 = vld [vmem:[%s2850_s4 + $0x440] sm:$0xff] }
 0x1a8   :  { %1553 = vmatpush3.msra.mxu0 %v555_v13  ;;  %1586 = vmatpush3.msra.mxu1 %v588_v14  ;;  %v657_v13 = vld [vmem:[%s2850_s4 + $0x548] sm:$0xff]  ;;  %v639_v14 = vld [vmem:[%s2850_s4 + $0x4b8] sm:$0xff] }
 0x1a9   :  { %1554 = vmatprep.subr.mxu0 %v570_v15  ;;  %1587 = vmatprep.subr.mxu1 %v603_v17  ;;  %v672_v15 = vld [vmem:[%s2850_s4 + $0x5c0] sm:$0xff]  ;;  %v623_v17 = vld [vmem:[%s2850_s4 + $0x438] sm:$0xff] }
 0x1aa   :  { %1555 = vmatpush3.msra.mxu0 %v554_v18  ;;  %1588 = vmatpush3.msra.mxu1 %v587_v19  ;;  %v656_v18 = vld [vmem:[%s2850_s4 + $0x540] sm:$0xff]  ;;  %v638_v19 = vld [vmem:[%s2850_s4 + $0x4b0] sm:$0xff] }
 0x1ab   :  { %1556 = vmatprep.subr.mxu0 %v569_v20  ;;  %1589 = vmatprep.subr.mxu1 %v602_v22  ;;  %v671_v20 = vld [vmem:[%s2850_s4 + $0x5b8] sm:$0xff]  ;;  %v622_v22 = vld [vmem:[%s2850_s4 + $0x430] sm:$0xff] }
 0x1ac   :  { %1557 = vmatpush3.msra.mxu0 %v553_v23  ;;  %1590 = vmatpush3.msra.mxu1 %v586_v24  ;;  %v655_v23 = vld [vmem:[%s2850_s4 + $0x538] sm:$0xff]  ;;  %v637_v24 = vld [vmem:[%s2850_s4 + $0x4a8] sm:$0xff] }
 0x1ad   :  { %1558 = vmatprep.subr.mxu0 %v568_v25  ;;  %1591 = vmatprep.subr.mxu1 %v601_v27  ;;  %v670_v25 = vld [vmem:[%s2850_s4 + $0x5b0] sm:$0xff]  ;;  %v621_v27 = vld [vmem:[%s2850_s4 + $0x428] sm:$0xff] }
 0x1ae   :  { %1559 = vmatpush3.msra.mxu0 %v552_v2  ;;  %1592 = vmatpush3.msra.mxu1 %v585_v30  ;;  %v636_v2 = vld [vmem:[%s2850_s4 + $0x4a0] sm:$0xff]  ;;  %v669_v30 = vld [vmem:[%s2850_s4 + $0x5a8] sm:$0xff] }
 0x1af   :  { %1445 = vmatmul.mubr.msk.f32.vlgmr.msra.gmra.mxu0 %vm471_vm11, %v459_v38  ;;  %1593 = vmatprep.subr.mxu1 %v600_v32  ;;  %v653_v32 = vld [vmem:[%s2850_s4 + $0x528] sm:$0xff]  ;;  %v634_v38 = vld [vmem:[%s2850_s4 + $0x490] sm:$0xff] }
 0x1b0   :  { %1598 = vmatprep.subr.mxu0 %v647_v35  ;;  %1594 = vmatpush3.msra.mxu1 %v584_v36  ;;  %v668_v35 = vld [vmem:[%s2850_s4 + $0x5a0] sm:$0xff]  ;;  %v619_v36 = vld [vmem:[%s2850_s4 + $0x418] sm:$0xff] }
 0x1b1   :  { %1599 = vmatpush3.msra.mxu0 %v631_v39  ;;  %1448 = vmatprep.mubr.msk.f32.mxu0 %vm471_vm11, %v464_v43  ;;  %v667_v39 = vld [vmem:[%s2850_s4 + $0x598] sm:$0xff]  ;;  %v617_v43 = vld [vmem:[%s2850_s4 + $0x408] sm:$0xff] }
 0x1b2   :  { %1447 = vmatmul.mubr.msk.f32.vlgmr.msra.gmra.mxu1 %vm471_vm11, %v461_v47  ;;  %1600 = vmatprep.subr.mxu0 %v646_v42  ;;  %v633_v42 = vld [vmem:[%s2850_s4 + $0x488] sm:$0xff] }
 0x1b3   :  { %1633 = vmatprep.subr.mxu1 %v679_v44  ;;  %1601 = vmatpush3.msra.mxu0 %v630_v45  ;;  %v650_v44 = vld [vmem:[%s2850_s4 + $0x510] sm:$0xff]  ;;  %v632_v45 = vld [vmem:[%s2850_s4 + $0x480] sm:$0xff]  ;;  %v665_v47 = vld [vmem:[%s2850_s4 + $0x588] sm:$0xff] }
 0x1b4   :  { %1634 = vmatpush3.msra.mxu1 %v663_v53  ;;  %1450 = vmatprep.mubr.msk.f32.mxu1 %vm471_vm11, %v466_v4  ;;  %v616_v53 = vld [vmem:[%s2850_s4 + $0x400] sm:$0xff] }
 0x1b5   :  { %1602 = vmatprep.subr.mxu0 %v645_v48  ;;  %1635 = vmatprep.subr.mxu1 %v678_v50  ;;  %v664_v48 = vld [vmem:[%s2850_s4 + $0x580] sm:$0xff]  ;;  %v711_v50 = vld [vmem:[%s2850_s4 + $0x6f8] sm:$0xff] }
 0x1b6   :  { %1603 = vmatpush3.msra.mxu0 %v629_v51  ;;  %1636 = vmatpush3.msra.mxu1 %v662_v49  ;;  %v648_v4 = vld [vmem:[%s2850_s4 + $0x500] sm:$0xff]  ;;  %v695_v51 = vld [vmem:[%s2850_s4 + $0x678] sm:$0xff]  ;;  %v710_v49 = vld [vmem:[%s2850_s4 + $0x6f0] sm:$0xff] }
 0x1b7   :  { %1604 = vmatprep.subr.mxu0 %v644_v52  ;;  %1637 = vmatprep.subr.mxu1 %v677_v54  ;;  %v743_v52 = vld [vmem:[%s2850_s4 + $0x7f8] sm:$0xff]  ;;  %v694_v54 = vld [vmem:[%s2850_s4 + $0x670] sm:$0xff] }
 0x1b8   :  { %1605 = vmatpush3.msra.mxu0 %v628_v55  ;;  %1638 = vmatpush3.msra.mxu1 %v661_v56  ;;  %v709_v55 = vld [vmem:[%s2850_s4 + $0x6e8] sm:$0xff]  ;;  %v742_v56 = vld [vmem:[%s2850_s4 + $0x7f0] sm:$0xff] }
 0x1b9   :  { %1606 = vmatprep.subr.mxu0 %v643_v57  ;;  %1639 = vmatprep.subr.mxu1 %v676_v58  ;;  %v726_v57 = vld [vmem:[%s2850_s4 + $0x770] sm:$0xff]  ;;  %v741_v58 = vld [vmem:[%s2850_s4 + $0x7e8] sm:$0xff] }
 0x1ba   :  { %1607 = vmatpush3.msra.mxu0 %v627_v59  ;;  %1640 = vmatpush3.msra.mxu1 %v660_v60  ;;  %v692_v59 = vld [vmem:[%s2850_s4 + $0x660] sm:$0xff]  ;;  %v725_v60 = vld [vmem:[%s2850_s4 + $0x768] sm:$0xff] }
 0x1bb   :  { %1608 = vmatprep.subr.mxu0 %v642_v61  ;;  %1641 = vmatprep.subr.mxu1 %v675_v62  ;;  %v740_v61 = vld [vmem:[%s2850_s4 + $0x7e0] sm:$0xff]  ;;  %v691_v62 = vld [vmem:[%s2850_s4 + $0x658] sm:$0xff] }
 0x1bc   :  { %1609 = vmatpush3.msra.mxu0 %v626_v63  ;;  %1642 = vmatpush3.msra.mxu1 %v659_v0  ;;  %v724_v63 = vld [vmem:[%s2850_s4 + $0x760] sm:$0xff]  ;;  %v706_v0 = vld [vmem:[%s2850_s4 + $0x6d0] sm:$0xff] }
 0x1bd   :  { %1610 = vmatprep.subr.mxu0 %v641_v3  ;;  %1643 = vmatprep.subr.mxu1 %v674_v5  ;;  %v739_v3 = vld [vmem:[%s2850_s4 + $0x7d8] sm:$0xff]  ;;  %v690_v5 = vld [vmem:[%s2850_s4 + $0x650] sm:$0xff] }
 0x1be   :  { %1611 = vmatpush3.msra.mxu0 %v625_v7  ;;  %1644 = vmatpush3.msra.mxu1 %v658_v9  ;;  %v723_v7 = vld [vmem:[%s2850_s4 + $0x758] sm:$0xff]  ;;  %v705_v9 = vld [vmem:[%s2850_s4 + $0x6c8] sm:$0xff] }
 0x1bf   :  { %1612 = vmatprep.subr.mxu0 %v640_v10  ;;  %1645 = vmatprep.subr.mxu1 %v673_v11  ;;  %v738_v10 = vld [vmem:[%s2850_s4 + $0x7d0] sm:$0xff]  ;;  %v689_v11 = vld [vmem:[%s2850_s4 + $0x648] sm:$0xff] }
 0x1c0   :  { %1613 = vmatpush3.msra.mxu0 %v624_v12  ;;  %1646 = vmatpush3.msra.mxu1 %v657_v13  ;;  %v722_v12 = vld [vmem:[%s2850_s4 + $0x750] sm:$0xff]  ;;  %v704_v13 = vld [vmem:[%s2850_s4 + $0x6c0] sm:$0xff] }
 0x1c1   :  { %1614 = vmatprep.subr.mxu0 %v639_v14  ;;  %1647 = vmatprep.subr.mxu1 %v672_v15  ;;  %v737_v14 = vld [vmem:[%s2850_s4 + $0x7c8] sm:$0xff]  ;;  %v688_v15 = vld [vmem:[%s2850_s4 + $0x640] sm:$0xff] }
 0x1c2   :  { %1615 = vmatpush3.msra.mxu0 %v623_v17  ;;  %1648 = vmatpush3.msra.mxu1 %v656_v18  ;;  %v721_v17 = vld [vmem:[%s2850_s4 + $0x748] sm:$0xff]  ;;  %v703_v18 = vld [vmem:[%s2850_s4 + $0x6b8] sm:$0xff] }
 0x1c3   :  { %1616 = vmatprep.subr.mxu0 %v638_v19  ;;  %1649 = vmatprep.subr.mxu1 %v671_v20  ;;  %v736_v19 = vld [vmem:[%s2850_s4 + $0x7c0] sm:$0xff]  ;;  %v687_v20 = vld [vmem:[%s2850_s4 + $0x638] sm:$0xff] }
 0x1c4   :  { %1617 = vmatpush3.msra.mxu0 %v622_v22  ;;  %1650 = vmatpush3.msra.mxu1 %v655_v23  ;;  %v720_v22 = vld [vmem:[%s2850_s4 + $0x740] sm:$0xff]  ;;  %v702_v23 = vld [vmem:[%s2850_s4 + $0x6b0] sm:$0xff] }
 0x1c5   :  { %1618 = vmatprep.subr.mxu0 %v637_v24  ;;  %1651 = vmatprep.subr.mxu1 %v670_v25  ;;  %v735_v24 = vld [vmem:[%s2850_s4 + $0x7b8] sm:$0xff]  ;;  %v686_v25 = vld [vmem:[%s2850_s4 + $0x630] sm:$0xff] }
 0x1c6   :  { %1619 = vmatpush3.msra.mxu0 %v621_v27  ;;  %1652 = vmatpush3.msra.mxu1 %v654_v28  ;;  %v719_v27 = vld [vmem:[%s2850_s4 + $0x738] sm:$0xff]  ;;  %v701_v28 = vld [vmem:[%s2850_s4 + $0x6a8] sm:$0xff] }
 0x1c7   :  { %1620 = vmatprep.subr.mxu0 %v636_v2  ;;  %1653 = vmatprep.subr.mxu1 %v669_v30  ;;  %v734_v2 = vld [vmem:[%s2850_s4 + $0x7b0] sm:$0xff]  ;;  %v685_v30 = vld [vmem:[%s2850_s4 + $0x628] sm:$0xff] }
 0x1c8   :  { %1621 = vmatpush3.msra.mxu0 %v620_v31  ;;  %1654 = vmatpush3.msra.mxu1 %v653_v32  ;;  %v718_v31 = vld [vmem:[%s2850_s4 + $0x730] sm:$0xff]  ;;  %v700_v32 = vld [vmem:[%s2850_s4 + $0x6a0] sm:$0xff] }
 0x1c9   :  { %1622 = vmatprep.subr.mxu0 %v635_v1  ;;  %1655 = vmatprep.subr.mxu1 %v668_v35  ;;  %v733_v1 = vld [vmem:[%s2850_s4 + $0x7a8] sm:$0xff]  ;;  %v684_v35 = vld [vmem:[%s2850_s4 + $0x620] sm:$0xff] }
 0x1ca   :  { %1623 = vmatpush3.msra.mxu0 %v619_v36  ;;  %1656 = vmatpush3.msra.mxu1 %v652_v37  ;;  %v717_v36 = vld [vmem:[%s2850_s4 + $0x728] sm:$0xff]  ;;  %v699_v37 = vld [vmem:[%s2850_s4 + $0x698] sm:$0xff] }
 0x1cb   :  { %1624 = vmatprep.subr.mxu0 %v634_v38  ;;  %1657 = vmatprep.subr.mxu1 %v667_v39  ;;  %v732_v38 = vld [vmem:[%s2850_s4 + $0x7a0] sm:$0xff]  ;;  %v683_v39 = vld [vmem:[%s2850_s4 + $0x618] sm:$0xff] }
 0x1cc   :  { %1625 = vmatpush3.msra.mxu0 %v618_v40  ;;  %1658 = vmatpush3.msra.mxu1 %v651_v41  ;;  %v716_v40 = vld [vmem:[%s2850_s4 + $0x720] sm:$0xff]  ;;  %v698_v41 = vld [vmem:[%s2850_s4 + $0x690] sm:$0xff] }
 0x1cd   :  { %1626 = vmatprep.subr.mxu0 %v633_v42  ;;  %1659 = vmatprep.subr.mxu1 %v666_v6  ;;  %v731_v42 = vld [vmem:[%s2850_s4 + $0x798] sm:$0xff]  ;;  %v682_v6 = vld [vmem:[%s2850_s4 + $0x610] sm:$0xff] }
 0x1ce   :  { %1627 = vmatpush3.msra.mxu0 %v617_v43  ;;  %1660 = vmatpush3.msra.mxu1 %v650_v44  ;;  %v715_v43 = vld [vmem:[%s2850_s4 + $0x718] sm:$0xff]  ;;  %v697_v44 = vld [vmem:[%s2850_s4 + $0x688] sm:$0xff] }
 0x1cf   :  { %1628 = vmatprep.subr.mxu0 %v632_v45  ;;  %1661 = vmatprep.subr.mxu1 %v665_v47  ;;  %v730_v45 = vld [vmem:[%s2850_s4 + $0x790] sm:$0xff]  ;;  %v681_v47 = vld [vmem:[%s2850_s4 + $0x608] sm:$0xff] }
 0x1d0   :  { %1629 = vmatpush3.msra.mxu0 %v616_v53  ;;  %1662 = vmatpush3.msra.mxu1 %v649_v46  ;;  %v714_v53 = vld [vmem:[%s2850_s4 + $0x710] sm:$0xff]  ;;  %v696_v46 = vld [vmem:[%s2850_s4 + $0x680] sm:$0xff] }
 0x1d1   :  { %1449 = vmatmul.mubr.msk.f32.vlgmr.msra.gmra.mxu0 %vm471_vm11, %v2195_v16  ;;  %1663 = vmatprep.subr.mxu1 %v664_v48  ;;  %v727_v16 = vld [vmem:[%s2850_s4 + $0x778] sm:$0xff]  ;;  %v729_v48 = vld [vmem:[%s2850_s4 + $0x788] sm:$0xff] }
 0x1d2   :  { %1668 = vmatprep.subr.mxu0 %v711_v50  ;;  %1664 = vmatpush3.msra.mxu1 %v648_v4  ;;  %v680_v50 = vld [vmem:[%s2850_s4 + $0x600] sm:$0xff]  ;;  %v713_v4 = vld [vmem:[%s2850_s4 + $0x708] sm:$0xff] }
 0x1d3   :  { %1669 = vmatpush3.msra.mxu0 %v695_v51  ;;  %1452 = vmatprep.mubr.msk.f32.mxu0 %vm471_vm11, %v2228_v29  ;;  %v693_v29 = vld [vmem:[%s2850_s4 + $0x668] sm:$0xff]  ;;  %v728_v51 = vld [vmem:[%s2850_s4 + $0x780] sm:$0xff] }
 0x1d4   :  { %1451 = vmatmul.mubr.msk.f32.vlgmr.msra.gmra.mxu1 %vm471_vm11, %v2207_v21  ;;  %1670 = vmatprep.subr.mxu0 %v710_v49  ;;  %v708_v21 = vld [vmem:[%s2850_s4 + $0x6e0] sm:$0xff] }
 0x1d5   :  { %1703 = vmatprep.subr.mxu1 %v743_v52  ;;  %1671 = vmatpush3.msra.mxu0 %v694_v54  ;;  %v712_v49 = vld [vmem:[%s2850_s4 + $0x700] sm:$0xff]  ;;  %v1315_v52 = vld [vmem:[%s2851_s6 + $0x18] sm:$0xff]  ;;  %v1314_v54 = vld [vmem:[%s2851_s6 + $0x10] sm:$0xff] }
 0x1d6   :  { %1704 = vmatpush3.msra.mxu1 %v727_v16  ;;  %1454 = vmatprep.mubr.msk.f32.mxu1 %vm471_vm11, %v2238_v33  ;;  %v707_v33 = vld [vmem:[%s2850_s4 + $0x6d8] sm:$0xff] }
 0x1d7   :  { %1672 = vmatprep.subr.mxu0 %v709_v55  ;;  %1705 = vmatprep.subr.mxu1 %v742_v56 }
 0x1d8   :  { %1673 = vmatpush3.msra.mxu0 %v693_v29  ;;  %1706 = vmatpush3.msra.mxu1 %v726_v57 }
 0x1d9   :  { %1674 = vmatprep.subr.mxu0 %v708_v21  ;;  %1707 = vmatprep.subr.mxu1 %v741_v58  ;;  %v1439_v21 = vld [vmem:[%s2852_s5] ss:$0 sm:$0xff] }
 0x1da   :  { %1675 = vmatpush3.msra.mxu0 %v692_v59  ;;  %1708 = vmatpush3.msra.mxu1 %v725_v60 }
 0x1db   :  { %1676 = vmatprep.subr.mxu0 %v707_v33  ;;  %1709 = vmatprep.subr.mxu1 %v740_v61 }
 0x1dc   :  { %1677 = vmatpush3.msra.mxu0 %v691_v62  ;;  %1710 = vmatpush3.msra.mxu1 %v724_v63 }
 0x1dd   :  { %1678 = vmatprep.subr.mxu0 %v706_v0  ;;  %1711 = vmatprep.subr.mxu1 %v739_v3 }
 0x1de   :  { %1679 = vmatpush3.msra.mxu0 %v690_v5  ;;  %1712 = vmatpush3.msra.mxu1 %v723_v7 }
 0x1df   :  { %1680 = vmatprep.subr.mxu0 %v705_v9  ;;  %1713 = vmatprep.subr.mxu1 %v738_v10 }
 0x1e0   :  { %1681 = vmatpush3.msra.mxu0 %v689_v11  ;;  %1714 = vmatpush3.msra.mxu1 %v722_v12 }
 0x1e1   :  { %1682 = vmatprep.subr.mxu0 %v704_v13  ;;  %1715 = vmatprep.subr.mxu1 %v737_v14 }
 0x1e2   :  { %1683 = vmatpush3.msra.mxu0 %v688_v15  ;;  %1716 = vmatpush3.msra.mxu1 %v721_v17 }
 0x1e3   :  { %1684 = vmatprep.subr.mxu0 %v703_v18  ;;  %1717 = vmatprep.subr.mxu1 %v736_v19 }
 0x1e4   :  { %1685 = vmatpush3.msra.mxu0 %v687_v20  ;;  %1718 = vmatpush3.msra.mxu1 %v720_v22 }
 0x1e5   :  { %1686 = vmatprep.subr.mxu0 %v702_v23  ;;  %1719 = vmatprep.subr.mxu1 %v735_v24 }
 0x1e6   :  { %1687 = vmatpush3.msra.mxu0 %v686_v25  ;;  %1720 = vmatpush3.msra.mxu1 %v719_v27 }
 0x1e7   :  { %1688 = vmatprep.subr.mxu0 %v701_v28  ;;  %1721 = vmatprep.subr.mxu1 %v734_v2  ;;  %v1456_v28 = vld [vmem:[%s2853_s7] ss:$0 sm:$0xff] }
 0x1e8   :  { %1689 = vmatpush3.msra.mxu0 %v685_v30  ;;  %1722 = vmatpush3.msra.mxu1 %v718_v31  ;;  %v1398_v30 = vld [vmem:[%s2854_s8] sm:$0xff] }
 0x1e9   :  { %1690 = vmatprep.subr.mxu0 %v700_v32  ;;  %1723 = vmatprep.subr.mxu1 %v733_v1  ;;  %v1401_v1 = vstv %s2855_s0 }
 0x1ea   :  { %1691 = vmatpush3.msra.mxu0 %v684_v35  ;;  %1724 = vmatpush3.msra.mxu1 %v717_v36 }
 0x1eb   :  { %1692 = vmatprep.subr.mxu0 %v699_v37  ;;  %1725 = vmatprep.subr.mxu1 %v732_v38 }
 0x1ec   :  { %1693 = vmatpush3.msra.mxu0 %v683_v39  ;;  %1726 = vmatpush3.msra.mxu1 %v716_v40 }
 0x1ed   :  { %1694 = vmatprep.subr.mxu0 %v698_v41  ;;  %1727 = vmatprep.subr.mxu1 %v731_v42 }
 0x1ee   :  { %1695 = vmatpush3.msra.mxu0 %v682_v6  ;;  %1728 = vmatpush3.msra.mxu1 %v715_v43 }
 0x1ef   :  { %1696 = vmatprep.subr.mxu0 %v697_v44  ;;  %1729 = vmatprep.subr.mxu1 %v730_v45 }
 0x1f0   :  { %1697 = vmatpush3.msra.mxu0 %v681_v47  ;;  %1730 = vmatpush3.msra.mxu1 %v714_v53 }
 0x1f1   :  { %1698 = vmatprep.subr.mxu0 %v696_v46  ;;  %1731 = vmatprep.subr.mxu1 %v729_v48 }
 0x1f2   :  { %1699 = vmatpush3.msra.mxu0 %v680_v50  ;;  %1732 = vmatpush3.msra.mxu1 %v713_v4 }
 0x1f3   :  { %1453 = vmatmul.mubr.msk.f32.vlgmr.msra.gmra.mxu0 %vm471_vm11, %v2217_v26  ;;  %1733 = vmatprep.subr.mxu1 %v728_v51  ;;  %v1313_v26 = vld [vmem:[%s2851_s6 + $0x8] sm:$0xff] }
 0x1f4   :  { %1734 = vmatpush3.msra.mxu1 %v712_v49  ;;  %1743 = vmatprep.subr.mxu0 %v1783_v8 }
 0x1f5   :  { %1455 = vmatmul.mubr.msk.f32.vlgmr.msra.gmra.mxu1 %vm471_vm11, %v2241_v34  ;;  %1744 = vmatpush3.msra.mxu0 %v1315_v52  ;;  %v1312_v34 = vld [vmem:[%s2851_s6] sm:$0xff] }
 0x1f6   :  { %1745 = vmatprep.subr.mxu0 %v1783_v8  ;;  %1751 = vmatprep.mubr.msk.f32.mxu0 %vm1785_vm12, %v1783_v8 }
 0x1f7   :  { %1746 = vmatpush3.msra.mxu0 %v1314_v54 }
 0x1f8   :  { %1747 = vmatprep.subr.mxu0 %v1783_v8 }
 0x1f9   :  { %1748 = vmatpush3.msra.mxu0 %v1313_v26 }
 0x1fa   :  { %1749 = vmatprep.subr.mxu0 %v1783_v8 }
 0x1fb   :  { %1750 = vmatpush3.msra.mxu0 %v1312_v34 }
 0x24e   :  { %v1490_v16 = vpop.f32.mrf.mxu0 }
 0x250   :  { %v1491_v55 = vpop.f32.mrf.mxu0 }
 0x251   :  { %v1525_v56 = vpop.f32.mrf.mxu1  ;;  %v1492_v57 = vadd.f32 %v1491_v55, %v1490_v16 }
 0x253   :  { %v1526_v58 = vpop.f32.mrf.mxu1  ;;  %v818_v33 = vadd.f32 %v1492_v57, %v1439_v21 }
 0x254   :  { %v1527_v61 = vadd.f32 %v1526_v58, %v1525_v56 }
 0x256   :  { %v888_v3 = vadd.f32 %v1527_v61, %v818_v33 }
 0x26f   :  { %v1560_v29 = vpop.f32.mrf.mxu0 }
 0x271   :  { %v1561_v59 = vpop.f32.mrf.mxu0 }
 0x272   :  { %v1595_v60 = vpop.f32.mrf.mxu1  ;;  %v1562_v63 = vadd.f32 %v1561_v59, %v1560_v29 }
 0x274   :  { %v1596_v0 = vpop.f32.mrf.mxu1  ;;  %v958_v7 = vadd.f32 %v1562_v63, %v888_v3 }
 0x275   :  { %v1597_v9 = vadd.f32 %v1596_v0, %v1595_v60 }
 0x277   :  { %v1028_v12 = vadd.f32 %v1597_v9, %v958_v7 }
 0x291   :  { %v1630_v62 = vpop.f32.mrf.mxu0 }
 0x293   :  { %v1631_v5 = vpop.f32.mrf.mxu0 }
 0x294   :  { %v1665_v8 = vpop.f32.mrf.mxu1  ;;  %v1632_v10 = vadd.f32 %v1631_v5, %v1630_v62 }
 0x296   :  { %v1666_v11 = vpop.f32.mrf.mxu1  ;;  %v1098_v13 = vadd.f32 %v1632_v10, %v1028_v12 }
 0x297   :  { %v1667_v14 = vadd.f32 %v1666_v11, %v1665_v8 }
 0x299   :  { %v1168_v19 = vadd.f32 %v1667_v14, %v1098_v13 }
 0x2b3   :  { %v1700_v15 = vpop.f32.mrf.mxu0 }
 0x2b5   :  { %v1701_v17 = vpop.f32.mrf.mxu0  ;;  %v1735_v18 = vpop.f32.mrf.mxu1 }
 0x2b6   :  { %v1702_v20 = vadd.f32 %v1701_v17, %v1700_v15 }
 0x2b7   :  { %v1736_v22 = vpop.f32.mrf.mxu1 }
 0x2b8   :  { %v1238_v23 = vadd.f32 %v1702_v20, %v1168_v19  ;;  %v1737_v24 = vadd.f32 %v1736_v22, %v1735_v18 }
 0x2ba   :  { %v1308_v25 = vadd.f32 %v1737_v24, %v1238_v23 }
 0x2bc   :  { %v1311_v27 = vmax.f32 %v1308_v25, 0.0 }
 0x2be   :  { %1752 = vmatmul.mubr.msk.f32.vlgmr.msra.gmra.mxu0 %vm1323_vm13, %v1311_v27 }
 0x37e   :  { %v1393_v2 = vpop.f32.mrf.mxu0 }
 0x37f   :  { %v1394_v31 = vadd.f32 %v1456_v28, %v1393_v2 }
 0x380   :  { %v1753_v32 = vpop.f32.mrf.mxu0 }
 0x381   :  { %1397 = vst [vmem:[%s2856_s10] sm:$0xff] %v1394_v31  ;;  %v1399_v35 = vadd.f32 %v1398_v30, %v1394_v31 }
 0x383   :  { %v1402_v36 = vmul.f32 %v1401_v1, %v1399_v35 }
 0x385   :  { %1403 = vmax.xlane.f32.xlu1 %v1402_v36 }
 0x40e   :  { %v1404_v37 = vpop.xlane.xlu1 %1403 }
 0x40f   :  { %v1405_v38 = vsub.f32 %v1402_v36, %v1404_v37 }
 0x411   :  { %v1406_v39 = vmul.f32 1.442695, %v1405_v38 }
 0x413   :  { %1771 = vpow2.f32 %v1406_v39 }
 0x420   :  { %v1772_v40 = vpop.eup %1771 }
 0x421   :  { %1408 = vadd.xlane.f32.xlu0 %v1772_v40 }
 0x4aa   :  { %v1409_v41 = vpop.xlane.xlu0 %1408 }
 0x4ab   :  { %1773 = vrcp.f32 %v1409_v41 }
 0x4b8   :  { %v1774_v42 = vpop.eup %1773 }
 0x4b9   :  { %v1411_v6 = vmul.f32 %v1774_v42, %v1772_v40 }
 0x4bb   :  { %1412 = vst [vmem:[%s2857_s9] sm:$0xff] %v1411_v6 }

</bundles_post_ra>
